<compile_context>
chip_gen: v7x
topology: tpu7x:2x2x1
jax: 0.10.0
libtpu: 0.0.40
codegen_flags: <defaults>
</compile_context>

<pallas_src>
import math
from functools import partial

import jax
import jax.numpy as jnp
from jax import lax
from jax.experimental import pallas as pl
from jax.experimental.pallas import tpu as pltpu


def _round_up(x, m):
    return (x + m - 1) // m * m


def _gru_kernel(p_ref, wrzh_ref, whh_ref, hall_ref, h_scratch, *, tc, hp):
    """One grid step = `tc` timesteps of the GRU recurrence.

    p_ref    : (tc, Bp, 3*Hp)  precomputed x-projections (+biases), time-major
    wrzh_ref : (Hp, 2*Hp)      fused [wrh | wzh]
    whh_ref  : (Hp, Hp)        candidate hidden weight
    hall_ref : (tc, Bp, Hp)    per-step hidden states (output)
    h_scratch: (Bp, Hp) f32    hidden state carried across grid chunks
    """
    c = pl.program_id(0)

    @pl.when(c == 0)
    def _():
        # h_prev is None on the very first step -> zeros (init exactly once).
        h_scratch[...] = jnp.zeros_like(h_scratch)

    # Hoist weight loads out of the time loop (constant across the chunk).
    wrzh = wrzh_ref[...]
    whh = whh_ref[...]
    cdt = wrzh.dtype

    def step(lt, h_prev):
        p = p_ref[lt]                           # (Bp, 3*Hp) f32, dense slab

        # Single fused hidden-side matmul for the r/z gates.
        rz = jnp.dot(h_prev.astype(cdt), wrzh,
                     preferred_element_type=jnp.float32)      # (Bp, 2*Hp)

        r = jax.nn.sigmoid(p[:, 0:hp] + rz[:, 0:hp])
        z = jax.nn.sigmoid(p[:, hp:2 * hp] + rz[:, hp:2 * hp])
        g = jnp.tanh(p[:, 2 * hp:3 * hp]
                     + jnp.dot((r * h_prev).astype(cdt), whh,
                               preferred_element_type=jnp.float32))
        # (1-z)*h + z*g  ==  h + z*(g - h)   (one fewer VALU op)
        h = h_prev + z * (g - h_prev)

        hall_ref[lt] = h.astype(hall_ref.dtype)   # dense (Bp, Hp) store
        return h                                  # carry h in registers

    unroll = True if tc <= 16 else 8
    h_last = lax.fori_loop(0, tc, step, h_scratch[...], unroll=unroll)
    h_scratch[...] = h_last                       # single VMEM write per chunk


def gru_forward(x, params, *, time_chunk=16, compute_dtype=jnp.float32):
    """x: (B, T, I) float32. Returns (h_final (B,1,H), h_all (B,T,H))."""
    B, T, I = x.shape
    H = params["whh"].shape[0]

    Bp = _round_up(max(B, 8), 8)          # sublane-dense batch
    Hp = _round_up(max(H, 128), 128)      # lane-dense hidden
    Tc = min(time_chunk, T)
    Tp = _round_up(T, Tc)
    n_chunks = Tp // Tc

    # ---- split & pad weights (one-time wrapper-side glue) --------------------
    wrx, wrh = params["wr"][:I], params["wr"][I:]
    wzx, wzh = params["wz"][:I], params["wz"][I:]
    whh, whx = params["whh"], params["whx"]
    br, bz, bh = params["br"], params["bz"], params["bh"]

    # Fused input-side projection weight (I, 3*Hp): [r | z | candidate],
    # with the biases folded in so they disappear as kernel inputs.
    wx_all = jnp.zeros((I, 3 * Hp), jnp.float32)
    wx_all = wx_all.at[:, 0:H].set(wrx)
    wx_all = wx_all.at[:, Hp:Hp + H].set(wzx)
    wx_all = wx_all.at[:, 2 * Hp:2 * Hp + H].set(whx)
    b_all = jnp.zeros((3 * Hp,), jnp.float32)
    b_all = b_all.at[0:H].set(br).at[Hp:Hp + H].set(bz).at[2 * Hp:2 * Hp + H].set(bh)

    # Fused hidden-side gate weight (Hp, 2*Hp): [wrh | wzh]; whh kept separate.
    wrzh = jnp.zeros((Hp, 2 * Hp), jnp.float32)
    wrzh = wrzh.at[:H, 0:H].set(wrh).at[:H, Hp:Hp + H].set(wzh)
    whh_p = jnp.zeros((Hp, Hp), jnp.float32).at[:H, :H].set(whh)
    wrzh = wrzh.astype(compute_dtype)
    whh_p = whh_p.astype(compute_dtype)

    # ---- hoisted x-projection: one big MXU-friendly matmul, time-major ------
    x_p = jnp.zeros((Bp, T, I), jnp.float32).at[:B].set(x)
    p_tm = jnp.einsum('bti,ic->tbc', x_p, wx_all,
                      preferred_element_type=jnp.float32) + b_all    # (T, Bp, 3Hp)
    if Tp != T:
        p_tm = jnp.pad(p_tm, ((0, Tp - T), (0, 0), (0, 0)))

    kernel = partial(_gru_kernel, tc=Tc, hp=Hp)

    h_all_tm = pl.pallas_call(
        kernel,
        out_shape=jax.ShapeDtypeStruct((Tp, Bp, Hp), jnp.float32),
        grid_spec=pltpu.PrefetchScalarGridSpec(
            num_scalar_prefetch=0,
            grid=(n_chunks,),
            in_specs=[
                pl.BlockSpec((Tc, Bp, 3 * Hp), lambda c: (c, 0, 0)),   # P chunk
                pl.BlockSpec((Hp, 2 * Hp), lambda c: (0, 0)),          # wrzh
                pl.BlockSpec((Hp, Hp), lambda c: (0, 0)),              # whh
            ],
            out_specs=pl.BlockSpec((Tc, Bp, Hp), lambda c: (c, 0, 0)),
            scratch_shapes=[pltpu.VMEM((Bp, Hp), jnp.float32)],
        ),
        compiler_params=pltpu.CompilerParams(
            dimension_semantics=("arbitrary",)),   # sequential recurrence
    )(p_tm, wrzh, whh_p)

    h_all = jnp.transpose(h_all_tm[:T, :B, :H], (1, 0, 2))   # (B, T, H)
    h_final = h_all_tm[T - 1, :B, :H][:, None, :]            # (B, 1, H)
    return h_final, h_all


def _xavier_uniform(key, shape):
    fan_in, fan_out = shape
    a = math.sqrt(6.0 / (fan_in + fan_out))
    return jax.random.uniform(key, shape, jnp.float32, -a, a)


def init_params(key, input_size, hidden_size):
    ks = jax.random.split(key, 4)
    concat = input_size + hidden_size
    return {
        "wr": _xavier_uniform(ks[0], (concat, hidden_size)),
        "wz": _xavier_uniform(ks[1], (concat, hidden_size)),
        "whh": _xavier_uniform(ks[2], (hidden_size, hidden_size)),
        "whx": _xavier_uniform(ks[3], (input_size, hidden_size)),
        "br": jnp.zeros((hidden_size,), jnp.float32),
        "bz": jnp.zeros((hidden_size,), jnp.float32),
        "bh": jnp.zeros((hidden_size,), jnp.float32),
    }


def _reference(x, params):
    B, T, I = x.shape
    H = params["whh"].shape[0]
    h = jnp.zeros((B, H), jnp.float32)
    hs = []
    for t in range(T):
        xt = x[:, t, :]
        xc = jnp.concatenate([xt, h], axis=-1)
        r = jax.nn.sigmoid(xc @ params["wr"] + params["br"])
        z = jax.nn.sigmoid(xc @ params["wz"] + params["bz"])
        g = jnp.tanh((r * h) @ params["whh"] + xt @ params["whx"] + params["bh"])
        h = (1.0 - z) * h + z * g
        hs.append(h)
    h_all = jnp.stack(hs, axis=1)
    return h_all[:, -1:, :], h_all


if __name__ == "__main__":
    B, T, I, H = 2, 8, 16, 32
    key = jax.random.PRNGKey(0)
    kx, kp = jax.random.split(key)
    x = jax.random.normal(kx, (B, T, I), jnp.float32)
    params = init_params(kp, I, H)

    h_final, h_all = jax.block_until_ready(gru_forward(x, params))

    ref_final, ref_all = _reference(x, params)
    assert h_final.shape == (B, 1, H)
    assert h_all.shape == (B, T, H)
    assert jnp.allclose(h_all, ref_all, atol=1e-5, rtol=1e-5)
    assert jnp.allclose(h_final, ref_final, atol=1e-5, rtol=1e-5)

    print("KERNEL_OK")
</pallas_src>

<mosaic_0001>
module attributes {stable_mosaic.version = 11 : i64} {
  func.func @_gru_kernel(%arg0: i32, %arg1: memref<8x8x384xf32, #tpu.memory_space<vmem>>, %arg2: memref<128x256xf32, #tpu.memory_space<vmem>>, %arg3: memref<128x128xf32, #tpu.memory_space<vmem>>, %arg4: memref<8x8x128xf32, #tpu.memory_space<vmem>>, %arg5: memref<8x128xf32, #tpu.memory_space<vmem>>) attributes {dimension_semantics = [#tpu.dimension_semantics<arbitrary>], iteration_bounds = array<i64: 1>, scalar_prefetch = 0 : i64, scratch_operands = 1 : i64, tpu.core_type = #tpu.core_type<tc>, window_params = [{transform_indices = @transform_0, window_bounds = array<i64: 8, 8, 384>}, {pipeline_mode = #tpu.pipeline_mode<synchronous>, transform_indices = @transform_1, window_bounds = array<i64: 128, 256>}, {pipeline_mode = #tpu.pipeline_mode<synchronous>, transform_indices = @transform_2, window_bounds = array<i64: 128, 128>}, {transform_indices = @transform_3, window_bounds = array<i64: 8, 8, 128>}]} {
    %c0_i32 = arith.constant 0 : i32
    %0 = arith.cmpi eq, %arg0, %c0_i32 : i32
    %1 = arith.extui %0 : i1 to i32
    %c0_i32_0 = arith.constant 0 : i32
    %2 = arith.cmpi ne, %1, %c0_i32_0 : i32
    scf.if %2 {
      %cst_72 = arith.constant 0.000000e+00 : f32
      %263 = vector.broadcast %cst_72 : f32 to vector<8x128xf32>
      %c0_73 = arith.constant 0 : index
      %c0_74 = arith.constant 0 : index
      %264 = vector.load %arg5[%c0_73, %c0_74] : memref<8x128xf32, #tpu.memory_space<vmem>>, vector<8x128xf32>
      tpu.vector_store %arg5[%c0_73, %c0_74], %263 {strides = array<i32>} : memref<8x128xf32, #tpu.memory_space<vmem>>, vector<8x128xf32>,
    } else {
    }
    %c0 = arith.constant 0 : index
    %c0_1 = arith.constant 0 : index
    %3 = vector.load %arg2[%c0, %c0_1] : memref<128x256xf32, #tpu.memory_space<vmem>>, vector<128x256xf32>
    %c0_2 = arith.constant 0 : index
    %c0_3 = arith.constant 0 : index
    %4 = vector.load %arg3[%c0_2, %c0_3] : memref<128x128xf32, #tpu.memory_space<vmem>>, vector<128x128xf32>
    %c0_4 = arith.constant 0 : index
    %c0_5 = arith.constant 0 : index
    %5 = vector.load %arg5[%c0_4, %c0_5] : memref<8x128xf32, #tpu.memory_space<vmem>>, vector<8x128xf32>
    %c0_i32_6 = arith.constant 0 : i32
    %6 = arith.index_cast %c0_i32_6 : i32 to index
    %c0_7 = arith.constant 0 : index
    %c0_8 = arith.constant 0 : index
    %7 = vector.load %arg1[%6, %c0_7, %c0_8] : memref<8x8x384xf32, #tpu.memory_space<vmem>>, vector<1x8x384xf32>
    %8 = vector.shape_cast %7 : vector<1x8x384xf32> to vector<8x384xf32>
    %cst = arith.constant dense<0.000000e+00> : vector<8x256xf32>
    %9 = tpu.matmul %5, %3, %cst {dimension_numbers = #tpu.dot_dimension_numbers<[1], [0], [0], [1], [0, 0, 1, 1], [], []>} : vector<8x128xf32>, vector<128x256xf32>, vector<8x256xf32> -> vector<8x256xf32>
    %10 = vector.extract_strided_slice %8 {offsets = [0, 0], sizes = [8, 128], strides = [1, 1]} : vector<8x384xf32> to vector<8x128xf32>
    %11 = vector.extract_strided_slice %9 {offsets = [0, 0], sizes = [8, 128], strides = [1, 1]} : vector<8x256xf32> to vector<8x128xf32>
    %12 = arith.addf %10, %11 : vector<8x128xf32>
    %13 = arith.negf %12 : vector<8x128xf32>
    %14 = math.exp %13 : vector<8x128xf32>
    %cst_9 = arith.constant 1.000000e+00 : f32
    %15 = vector.broadcast %cst_9 : f32 to vector<8x128xf32>
    %16 = arith.addf %15, %14 : vector<8x128xf32>
    %17 = arith.divf %15, %16 : vector<8x128xf32>
    %18 = vector.extract_strided_slice %8 {offsets = [0, 128], sizes = [8, 128], strides = [1, 1]} : vector<8x384xf32> to vector<8x128xf32>
    %19 = vector.extract_strided_slice %9 {offsets = [0, 128], sizes = [8, 128], strides = [1, 1]} : vector<8x256xf32> to vector<8x128xf32>
    %20 = arith.addf %18, %19 : vector<8x128xf32>
    %21 = arith.negf %20 : vector<8x128xf32>
    %22 = math.exp %21 : vector<8x128xf32>
    %cst_10 = arith.constant 1.000000e+00 : f32
    %23 = vector.broadcast %cst_10 : f32 to vector<8x128xf32>
    %24 = arith.addf %23, %22 : vector<8x128xf32>
    %25 = arith.divf %23, %24 : vector<8x128xf32>
    %26 = vector.extract_strided_slice %8 {offsets = [0, 256], sizes = [8, 128], strides = [1, 1]} : vector<8x384xf32> to vector<8x128xf32>
    %27 = arith.mulf %17, %5 : vector<8x128xf32>
    %cst_11 = arith.constant dense<0.000000e+00> : vector<8x128xf32>
    %28 = tpu.matmul %27, %4, %cst_11 {dimension_numbers = #tpu.dot_dimension_numbers<[1], [0], [0], [1], [0, 0, 1, 1], [], []>} : vector<8x128xf32>, vector<128x128xf32>, vector<8x128xf32> -> vector<8x128xf32>
    %29 = arith.addf %26, %28 : vector<8x128xf32>
    %30 = math.tanh %29 : vector<8x128xf32>
    %31 = arith.subf %30, %5 : vector<8x128xf32>
    %32 = arith.mulf %25, %31 : vector<8x128xf32>
    %33 = arith.addf %5, %32 : vector<8x128xf32>
    %34 = arith.index_cast %c0_i32_6 : i32 to index
    %c0_12 = arith.constant 0 : index
    %c0_13 = arith.constant 0 : index
    %35 = vector.load %arg4[%34, %c0_12, %c0_13] : memref<8x8x128xf32, #tpu.memory_space<vmem>>, vector<1x8x128xf32>
    %36 = vector.shape_cast %35 : vector<1x8x128xf32> to vector<8x128xf32>
    %37 = vector.shape_cast %33 : vector<8x128xf32> to vector<1x8x128xf32>
    tpu.vector_store %arg4[%34, %c0_12, %c0_13], %37 {strides = array<i32>} : memref<8x8x128xf32, #tpu.memory_space<vmem>>, vector<1x8x128xf32>,
    %c1_i32 = arith.constant 1 : i32
    %38 = arith.index_cast %c1_i32 : i32 to index
    %c0_14 = arith.constant 0 : index
    %c0_15 = arith.constant 0 : index
    %39 = vector.load %arg1[%38, %c0_14, %c0_15] : memref<8x8x384xf32, #tpu.memory_space<vmem>>, vector<1x8x384xf32>
    %40 = vector.shape_cast %39 : vector<1x8x384xf32> to vector<8x384xf32>
    %cst_16 = arith.constant dense<0.000000e+00> : vector<8x256xf32>
    %41 = tpu.matmul %33, %3, %cst_16 {dimension_numbers = #tpu.dot_dimension_numbers<[1], [0], [0], [1], [0, 0, 1, 1], [], []>} : vector<8x128xf32>, vector<128x256xf32>, vector<8x256xf32> -> vector<8x256xf32>
    %42 = vector.extract_strided_slice %40 {offsets = [0, 0], sizes = [8, 128], strides = [1, 1]} : vector<8x384xf32> to vector<8x128xf32>
    %43 = vector.extract_strided_slice %41 {offsets = [0, 0], sizes = [8, 128], strides = [1, 1]} : vector<8x256xf32> to vector<8x128xf32>
    %44 = arith.addf %42, %43 : vector<8x128xf32>
    %45 = arith.negf %44 : vector<8x128xf32>
    %46 = math.exp %45 : vector<8x128xf32>
    %cst_17 = arith.constant 1.000000e+00 : f32
    %47 = vector.broadcast %cst_17 : f32 to vector<8x128xf32>
    %48 = arith.addf %47, %46 : vector<8x128xf32>
    %49 = arith.divf %47, %48 : vector<8x128xf32>
    %50 = vector.extract_strided_slice %40 {offsets = [0, 128], sizes = [8, 128], strides = [1, 1]} : vector<8x384xf32> to vector<8x128xf32>
    %51 = vector.extract_strided_slice %41 {offsets = [0, 128], sizes = [8, 128], strides = [1, 1]} : vector<8x256xf32> to vector<8x128xf32>
    %52 = arith.addf %50, %51 : vector<8x128xf32>
    %53 = arith.negf %52 : vector<8x128xf32>
    %54 = math.exp %53 : vector<8x128xf32>
    %cst_18 = arith.constant 1.000000e+00 : f32
    %55 = vector.broadcast %cst_18 : f32 to vector<8x128xf32>
    %56 = arith.addf %55, %54 : vector<8x128xf32>
    %57 = arith.divf %55, %56 : vector<8x128xf32>
    %58 = vector.extract_strided_slice %40 {offsets = [0, 256], sizes = [8, 128], strides = [1, 1]} : vector<8x384xf32> to vector<8x128xf32>
    %59 = arith.mulf %49, %33 : vector<8x128xf32>
    %cst_19 = arith.constant dense<0.000000e+00> : vector<8x128xf32>
    %60 = tpu.matmul %59, %4, %cst_19 {dimension_numbers = #tpu.dot_dimension_numbers<[1], [0], [0], [1], [0, 0, 1, 1], [], []>} : vector<8x128xf32>, vector<128x128xf32>, vector<8x128xf32> -> vector<8x128xf32>
    %61 = arith.addf %58, %60 : vector<8x128xf32>
    %62 = math.tanh %61 : vector<8x128xf32>
    %63 = arith.subf %62, %33 : vector<8x128xf32>
    %64 = arith.mulf %57, %63 : vector<8x128xf32>
    %65 = arith.addf %33, %64 : vector<8x128xf32>
    %66 = arith.index_cast %c1_i32 : i32 to index
    %c0_20 = arith.constant 0 : index
    %c0_21 = arith.constant 0 : index
    %67 = vector.load %arg4[%66, %c0_20, %c0_21] : memref<8x8x128xf32, #tpu.memory_space<vmem>>, vector<1x8x128xf32>
    %68 = vector.shape_cast %67 : vector<1x8x128xf32> to vector<8x128xf32>
    %69 = vector.shape_cast %65 : vector<8x128xf32> to vector<1x8x128xf32>
    tpu.vector_store %arg4[%66, %c0_20, %c0_21], %69 {strides = array<i32>} : memref<8x8x128xf32, #tpu.memory_space<vmem>>, vector<1x8x128xf32>,
    %c2_i32 = arith.constant 2 : i32
    %70 = arith.index_cast %c2_i32 : i32 to index
    %c0_22 = arith.constant 0 : index
    %c0_23 = arith.constant 0 : index
    %71 = vector.load %arg1[%70, %c0_22, %c0_23] : memref<8x8x384xf32, #tpu.memory_space<vmem>>, vector<1x8x384xf32>
    %72 = vector.shape_cast %71 : vector<1x8x384xf32> to vector<8x384xf32>
    %cst_24 = arith.constant dense<0.000000e+00> : vector<8x256xf32>
    %73 = tpu.matmul %65, %3, %cst_24 {dimension_numbers = #tpu.dot_dimension_numbers<[1], [0], [0], [1], [0, 0, 1, 1], [], []>} : vector<8x128xf32>, vector<128x256xf32>, vector<8x256xf32> -> vector<8x256xf32>
    %74 = vector.extract_strided_slice %72 {offsets = [0, 0], sizes = [8, 128], strides = [1, 1]} : vector<8x384xf32> to vector<8x128xf32>
    %75 = vector.extract_strided_slice %73 {offsets = [0, 0], sizes = [8, 128], strides = [1, 1]} : vector<8x256xf32> to vector<8x128xf32>
    %76 = arith.addf %74, %75 : vector<8x128xf32>
    %77 = arith.negf %76 : vector<8x128xf32>
    %78 = math.exp %77 : vector<8x128xf32>
    %cst_25 = arith.constant 1.000000e+00 : f32
    %79 = vector.broadcast %cst_25 : f32 to vector<8x128xf32>
    %80 = arith.addf %79, %78 : vector<8x128xf32>
    %81 = arith.divf %79, %80 : vector<8x128xf32>
    %82 = vector.extract_strided_slice %72 {offsets = [0, 128], sizes = [8, 128], strides = [1, 1]} : vector<8x384xf32> to vector<8x128xf32>
    %83 = vector.extract_strided_slice %73 {offsets = [0, 128], sizes = [8, 128], strides = [1, 1]} : vector<8x256xf32> to vector<8x128xf32>
    %84 = arith.addf %82, %83 : vector<8x128xf32>
    %85 = arith.negf %84 : vector<8x128xf32>
    %86 = math.exp %85 : vector<8x128xf32>
    %cst_26 = arith.constant 1.000000e+00 : f32
    %87 = vector.broadcast %cst_26 : f32 to vector<8x128xf32>
    %88 = arith.addf %87, %86 : vector<8x128xf32>
    %89 = arith.divf %87, %88 : vector<8x128xf32>
    %90 = vector.extract_strided_slice %72 {offsets = [0, 256], sizes = [8, 128], strides = [1, 1]} : vector<8x384xf32> to vector<8x128xf32>
    %91 = arith.mulf %81, %65 : vector<8x128xf32>
    %cst_27 = arith.constant dense<0.000000e+00> : vector<8x128xf32>
    %92 = tpu.matmul %91, %4, %cst_27 {dimension_numbers = #tpu.dot_dimension_numbers<[1], [0], [0], [1], [0, 0, 1, 1], [], []>} : vector<8x128xf32>, vector<128x128xf32>, vector<8x128xf32> -> vector<8x128xf32>
    %93 = arith.addf %90, %92 : vector<8x128xf32>
    %94 = math.tanh %93 : vector<8x128xf32>
    %95 = arith.subf %94, %65 : vector<8x128xf32>
    %96 = arith.mulf %89, %95 : vector<8x128xf32>
    %97 = arith.addf %65, %96 : vector<8x128xf32>
    %98 = arith.index_cast %c2_i32 : i32 to index
    %c0_28 = arith.constant 0 : index
    %c0_29 = arith.constant 0 : index
    %99 = vector.load %arg4[%98, %c0_28, %c0_29] : memref<8x8x128xf32, #tpu.memory_space<vmem>>, vector<1x8x128xf32>
    %100 = vector.shape_cast %99 : vector<1x8x128xf32> to vector<8x128xf32>
    %101 = vector.shape_cast %97 : vector<8x128xf32> to vector<1x8x128xf32>
    tpu.vector_store %arg4[%98, %c0_28, %c0_29], %101 {strides = array<i32>} : memref<8x8x128xf32, #tpu.memory_space<vmem>>, vector<1x8x128xf32>,
    %c3_i32 = arith.constant 3 : i32
    %102 = arith.index_cast %c3_i32 : i32 to index
    %c0_30 = arith.constant 0 : index
    %c0_31 = arith.constant 0 : index
    %103 = vector.load %arg1[%102, %c0_30, %c0_31] : memref<8x8x384xf32, #tpu.memory_space<vmem>>, vector<1x8x384xf32>
    %104 = vector.shape_cast %103 : vector<1x8x384xf32> to vector<8x384xf32>
    %cst_32 = arith.constant dense<0.000000e+00> : vector<8x256xf32>
    %105 = tpu.matmul %97, %3, %cst_32 {dimension_numbers = #tpu.dot_dimension_numbers<[1], [0], [0], [1], [0, 0, 1, 1], [], []>} : vector<8x128xf32>, vector<128x256xf32>, vector<8x256xf32> -> vector<8x256xf32>
    %106 = vector.extract_strided_slice %104 {offsets = [0, 0], sizes = [8, 128], strides = [1, 1]} : vector<8x384xf32> to vector<8x128xf32>
    %107 = vector.extract_strided_slice %105 {offsets = [0, 0], sizes = [8, 128], strides = [1, 1]} : vector<8x256xf32> to vector<8x128xf32>
    %108 = arith.addf %106, %107 : vector<8x128xf32>
    %109 = arith.negf %108 : vector<8x128xf32>
    %110 = math.exp %109 : vector<8x128xf32>
    %cst_33 = arith.constant 1.000000e+00 : f32
    %111 = vector.broadcast %cst_33 : f32 to vector<8x128xf32>
    %112 = arith.addf %111, %110 : vector<8x128xf32>
    %113 = arith.divf %111, %112 : vector<8x128xf32>
    %114 = vector.extract_strided_slice %104 {offsets = [0, 128], sizes = [8, 128], strides = [1, 1]} : vector<8x384xf32> to vector<8x128xf32>
    %115 = vector.extract_strided_slice %105 {offsets = [0, 128], sizes = [8, 128], strides = [1, 1]} : vector<8x256xf32> to vector<8x128xf32>
    %116 = arith.addf %114, %115 : vector<8x128xf32>
    %117 = arith.negf %116 : vector<8x128xf32>
    %118 = math.exp %117 : vector<8x128xf32>
    %cst_34 = arith.constant 1.000000e+00 : f32
    %119 = vector.broadcast %cst_34 : f32 to vector<8x128xf32>
    %120 = arith.addf %119, %118 : vector<8x128xf32>
    %121 = arith.divf %119, %120 : vector<8x128xf32>
    %122 = vector.extract_strided_slice %104 {offsets = [0, 256], sizes = [8, 128], strides = [1, 1]} : vector<8x384xf32> to vector<8x128xf32>
    %123 = arith.mulf %113, %97 : vector<8x128xf32>
    %cst_35 = arith.constant dense<0.000000e+00> : vector<8x128xf32>
    %124 = tpu.matmul %123, %4, %cst_35 {dimension_numbers = #tpu.dot_dimension_numbers<[1], [0], [0], [1], [0, 0, 1, 1], [], []>} : vector<8x128xf32>, vector<128x128xf32>, vector<8x128xf32> -> vector<8x128xf32>
    %125 = arith.addf %122, %124 : vector<8x128xf32>
    %126 = math.tanh %125 : vector<8x128xf32>
    %127 = arith.subf %126, %97 : vector<8x128xf32>
    %128 = arith.mulf %121, %127 : vector<8x128xf32>
    %129 = arith.addf %97, %128 : vector<8x128xf32>
    %130 = arith.index_cast %c3_i32 : i32 to index
    %c0_36 = arith.constant 0 : index
    %c0_37 = arith.constant 0 : index
    %131 = vector.load %arg4[%130, %c0_36, %c0_37] : memref<8x8x128xf32, #tpu.memory_space<vmem>>, vector<1x8x128xf32>
    %132 = vector.shape_cast %131 : vector<1x8x128xf32> to vector<8x128xf32>
    %133 = vector.shape_cast %129 : vector<8x128xf32> to vector<1x8x128xf32>
    tpu.vector_store %arg4[%130, %c0_36, %c0_37], %133 {strides = array<i32>} : memref<8x8x128xf32, #tpu.memory_space<vmem>>, vector<1x8x128xf32>,
    %c4_i32 = arith.constant 4 : i32
    %134 = arith.index_cast %c4_i32 : i32 to index
    %c0_38 = arith.constant 0 : index
    %c0_39 = arith.constant 0 : index
    %135 = vector.load %arg1[%134, %c0_38, %c0_39] : memref<8x8x384xf32, #tpu.memory_space<vmem>>, vector<1x8x384xf32>
    %136 = vector.shape_cast %135 : vector<1x8x384xf32> to vector<8x384xf32>
    %cst_40 = arith.constant dense<0.000000e+00> : vector<8x256xf32>
    %137 = tpu.matmul %129, %3, %cst_40 {dimension_numbers = #tpu.dot_dimension_numbers<[1], [0], [0], [1], [0, 0, 1, 1], [], []>} : vector<8x128xf32>, vector<128x256xf32>, vector<8x256xf32> -> vector<8x256xf32>
    %138 = vector.extract_strided_slice %136 {offsets = [0, 0], sizes = [8, 128], strides = [1, 1]} : vector<8x384xf32> to vector<8x128xf32>
    %139 = vector.extract_strided_slice %137 {offsets = [0, 0], sizes = [8, 128], strides = [1, 1]} : vector<8x256xf32> to vector<8x128xf32>
    %140 = arith.addf %138, %139 : vector<8x128xf32>
    %141 = arith.negf %140 : vector<8x128xf32>
    %142 = math.exp %141 : vector<8x128xf32>
    %cst_41 = arith.constant 1.000000e+00 : f32
    %143 = vector.broadcast %cst_41 : f32 to vector<8x128xf32>
    %144 = arith.addf %143, %142 : vector<8x128xf32>
    %145 = arith.divf %143, %144 : vector<8x128xf32>
    %146 = vector.extract_strided_slice %136 {offsets = [0, 128], sizes = [8, 128], strides = [1, 1]} : vector<8x384xf32> to vector<8x128xf32>
    %147 = vector.extract_strided_slice %137 {offsets = [0, 128], sizes = [8, 128], strides = [1, 1]} : vector<8x256xf32> to vector<8x128xf32>
    %148 = arith.addf %146, %147 : vector<8x128xf32>
    %149 = arith.negf %148 : vector<8x128xf32>
    %150 = math.exp %149 : vector<8x128xf32>
    %cst_42 = arith.constant 1.000000e+00 : f32
    %151 = vector.broadcast %cst_42 : f32 to vector<8x128xf32>
    %152 = arith.addf %151, %150 : vector<8x128xf32>
    %153 = arith.divf %151, %152 : vector<8x128xf32>
    %154 = vector.extract_strided_slice %136 {offsets = [0, 256], sizes = [8, 128], strides = [1, 1]} : vector<8x384xf32> to vector<8x128xf32>
    %155 = arith.mulf %145, %129 : vector<8x128xf32>
    %cst_43 = arith.constant dense<0.000000e+00> : vector<8x128xf32>
    %156 = tpu.matmul %155, %4, %cst_43 {dimension_numbers = #tpu.dot_dimension_numbers<[1], [0], [0], [1], [0, 0, 1, 1], [], []>} : vector<8x128xf32>, vector<128x128xf32>, vector<8x128xf32> -> vector<8x128xf32>
    %157 = arith.addf %154, %156 : vector<8x128xf32>
    %158 = math.tanh %157 : vector<8x128xf32>
    %159 = arith.subf %158, %129 : vector<8x128xf32>
    %160 = arith.mulf %153, %159 : vector<8x128xf32>
    %161 = arith.addf %129, %160 : vector<8x128xf32>
    %162 = arith.index_cast %c4_i32 : i32 to index
    %c0_44 = arith.constant 0 : index
    %c0_45 = arith.constant 0 : index
    %163 = vector.load %arg4[%162, %c0_44, %c0_45] : memref<8x8x128xf32, #tpu.memory_space<vmem>>, vector<1x8x128xf32>
    %164 = vector.shape_cast %163 : vector<1x8x128xf32> to vector<8x128xf32>
    %165 = vector.shape_cast %161 : vector<8x128xf32> to vector<1x8x128xf32>
    tpu.vector_store %arg4[%162, %c0_44, %c0_45], %165 {strides = array<i32>} : memref<8x8x128xf32, #tpu.memory_space<vmem>>, vector<1x8x128xf32>,
    %c5_i32 = arith.constant 5 : i32
    %166 = arith.index_cast %c5_i32 : i32 to index
    %c0_46 = arith.constant 0 : index
    %c0_47 = arith.constant 0 : index
    %167 = vector.load %arg1[%166, %c0_46, %c0_47] : memref<8x8x384xf32, #tpu.memory_space<vmem>>, vector<1x8x384xf32>
    %168 = vector.shape_cast %167 : vector<1x8x384xf32> to vector<8x384xf32>
    %cst_48 = arith.constant dense<0.000000e+00> : vector<8x256xf32>
    %169 = tpu.matmul %161, %3, %cst_48 {dimension_numbers = #tpu.dot_dimension_numbers<[1], [0], [0], [1], [0, 0, 1, 1], [], []>} : vector<8x128xf32>, vector<128x256xf32>, vector<8x256xf32> -> vector<8x256xf32>
    %170 = vector.extract_strided_slice %168 {offsets = [0, 0], sizes = [8, 128], strides = [1, 1]} : vector<8x384xf32> to vector<8x128xf32>
    %171 = vector.extract_strided_slice %169 {offsets = [0, 0], sizes = [8, 128], strides = [1, 1]} : vector<8x256xf32> to vector<8x128xf32>
    %172 = arith.addf %170, %171 : vector<8x128xf32>
    %173 = arith.negf %172 : vector<8x128xf32>
    %174 = math.exp %173 : vector<8x128xf32>
    %cst_49 = arith.constant 1.000000e+00 : f32
    %175 = vector.broadcast %cst_49 : f32 to vector<8x128xf32>
    %176 = arith.addf %175, %174 : vector<8x128xf32>
    %177 = arith.divf %175, %176 : vector<8x128xf32>
    %178 = vector.extract_strided_slice %168 {offsets = [0, 128], sizes = [8, 128], strides = [1, 1]} : vector<8x384xf32> to vector<8x128xf32>
    %179 = vector.extract_strided_slice %169 {offsets = [0, 128], sizes = [8, 128], strides = [1, 1]} : vector<8x256xf32> to vector<8x128xf32>
    %180 = arith.addf %178, %179 : vector<8x128xf32>
    %181 = arith.negf %180 : vector<8x128xf32>
    %182 = math.exp %181 : vector<8x128xf32>
    %cst_50 = arith.constant 1.000000e+00 : f32
    %183 = vector.broadcast %cst_50 : f32 to vector<8x128xf32>
    %184 = arith.addf %183, %182 : vector<8x128xf32>
    %185 = arith.divf %183, %184 : vector<8x128xf32>
    %186 = vector.extract_strided_slice %168 {offsets = [0, 256], sizes = [8, 128], strides = [1, 1]} : vector<8x384xf32> to vector<8x128xf32>
    %187 = arith.mulf %177, %161 : vector<8x128xf32>
    %cst_51 = arith.constant dense<0.000000e+00> : vector<8x128xf32>
    %188 = tpu.matmul %187, %4, %cst_51 {dimension_numbers = #tpu.dot_dimension_numbers<[1], [0], [0], [1], [0, 0, 1, 1], [], []>} : vector<8x128xf32>, vector<128x128xf32>, vector<8x128xf32> -> vector<8x128xf32>
    %189 = arith.addf %186, %188 : vector<8x128xf32>
    %190 = math.tanh %189 : vector<8x128xf32>
    %191 = arith.subf %190, %161 : vector<8x128xf32>
    %192 = arith.mulf %185, %191 : vector<8x128xf32>
    %193 = arith.addf %161, %192 : vector<8x128xf32>
    %194 = arith.index_cast %c5_i32 : i32 to index
    %c0_52 = arith.constant 0 : index
    %c0_53 = arith.constant 0 : index
    %195 = vector.load %arg4[%194, %c0_52, %c0_53] : memref<8x8x128xf32, #tpu.memory_space<vmem>>, vector<1x8x128xf32>
    %196 = vector.shape_cast %195 : vector<1x8x128xf32> to vector<8x128xf32>
    %197 = vector.shape_cast %193 : vector<8x128xf32> to vector<1x8x128xf32>
    tpu.vector_store %arg4[%194, %c0_52, %c0_53], %197 {strides = array<i32>} : memref<8x8x128xf32, #tpu.memory_space<vmem>>, vector<1x8x128xf32>,
    %c6_i32 = arith.constant 6 : i32
    %198 = arith.index_cast %c6_i32 : i32 to index
    %c0_54 = arith.constant 0 : index
    %c0_55 = arith.constant 0 : index
    %199 = vector.load %arg1[%198, %c0_54, %c0_55] : memref<8x8x384xf32, #tpu.memory_space<vmem>>, vector<1x8x384xf32>
    %200 = vector.shape_cast %199 : vector<1x8x384xf32> to vector<8x384xf32>
    %cst_56 = arith.constant dense<0.000000e+00> : vector<8x256xf32>
    %201 = tpu.matmul %193, %3, %cst_56 {dimension_numbers = #tpu.dot_dimension_numbers<[1], [0], [0], [1], [0, 0, 1, 1], [], []>} : vector<8x128xf32>, vector<128x256xf32>, vector<8x256xf32> -> vector<8x256xf32>
    %202 = vector.extract_strided_slice %200 {offsets = [0, 0], sizes = [8, 128], strides = [1, 1]} : vector<8x384xf32> to vector<8x128xf32>
    %203 = vector.extract_strided_slice %201 {offsets = [0, 0], sizes = [8, 128], strides = [1, 1]} : vector<8x256xf32> to vector<8x128xf32>
    %204 = arith.addf %202, %203 : vector<8x128xf32>
    %205 = arith.negf %204 : vector<8x128xf32>
    %206 = math.exp %205 : vector<8x128xf32>
    %cst_57 = arith.constant 1.000000e+00 : f32
    %207 = vector.broadcast %cst_57 : f32 to vector<8x128xf32>
    %208 = arith.addf %207, %206 : vector<8x128xf32>
    %209 = arith.divf %207, %208 : vector<8x128xf32>
    %210 = vector.extract_strided_slice %200 {offsets = [0, 128], sizes = [8, 128], strides = [1, 1]} : vector<8x384xf32> to vector<8x128xf32>
    %211 = vector.extract_strided_slice %201 {offsets = [0, 128], sizes = [8, 128], strides = [1, 1]} : vector<8x256xf32> to vector<8x128xf32>
    %212 = arith.addf %210, %211 : vector<8x128xf32>
    %213 = arith.negf %212 : vector<8x128xf32>
    %214 = math.exp %213 : vector<8x128xf32>
    %cst_58 = arith.constant 1.000000e+00 : f32
    %215 = vector.broadcast %cst_58 : f32 to vector<8x128xf32>
    %216 = arith.addf %215, %214 : vector<8x128xf32>
    %217 = arith.divf %215, %216 : vector<8x128xf32>
    %218 = vector.extract_strided_slice %200 {offsets = [0, 256], sizes = [8, 128], strides = [1, 1]} : vector<8x384xf32> to vector<8x128xf32>
    %219 = arith.mulf %209, %193 : vector<8x128xf32>
    %cst_59 = arith.constant dense<0.000000e+00> : vector<8x128xf32>
    %220 = tpu.matmul %219, %4, %cst_59 {dimension_numbers = #tpu.dot_dimension_numbers<[1], [0], [0], [1], [0, 0, 1, 1], [], []>} : vector<8x128xf32>, vector<128x128xf32>, vector<8x128xf32> -> vector<8x128xf32>
    %221 = arith.addf %218, %220 : vector<8x128xf32>
    %222 = math.tanh %221 : vector<8x128xf32>
    %223 = arith.subf %222, %193 : vector<8x128xf32>
    %224 = arith.mulf %217, %223 : vector<8x128xf32>
    %225 = arith.addf %193, %224 : vector<8x128xf32>
    %226 = arith.index_cast %c6_i32 : i32 to index
    %c0_60 = arith.constant 0 : index
    %c0_61 = arith.constant 0 : index
    %227 = vector.load %arg4[%226, %c0_60, %c0_61] : memref<8x8x128xf32, #tpu.memory_space<vmem>>, vector<1x8x128xf32>
    %228 = vector.shape_cast %227 : vector<1x8x128xf32> to vector<8x128xf32>
    %229 = vector.shape_cast %225 : vector<8x128xf32> to vector<1x8x128xf32>
    tpu.vector_store %arg4[%226, %c0_60, %c0_61], %229 {strides = array<i32>} : memref<8x8x128xf32, #tpu.memory_space<vmem>>, vector<1x8x128xf32>,
    %c7_i32 = arith.constant 7 : i32
    %230 = arith.index_cast %c7_i32 : i32 to index
    %c0_62 = arith.constant 0 : index
    %c0_63 = arith.constant 0 : index
    %231 = vector.load %arg1[%230, %c0_62, %c0_63] : memref<8x8x384xf32, #tpu.memory_space<vmem>>, vector<1x8x384xf32>
    %232 = vector.shape_cast %231 : vector<1x8x384xf32> to vector<8x384xf32>
    %cst_64 = arith.constant dense<0.000000e+00> : vector<8x256xf32>
    %233 = tpu.matmul %225, %3, %cst_64 {dimension_numbers = #tpu.dot_dimension_numbers<[1], [0], [0], [1], [0, 0, 1, 1], [], []>} : vector<8x128xf32>, vector<128x256xf32>, vector<8x256xf32> -> vector<8x256xf32>
    %234 = vector.extract_strided_slice %232 {offsets = [0, 0], sizes = [8, 128], strides = [1, 1]} : vector<8x384xf32> to vector<8x128xf32>
    %235 = vector.extract_strided_slice %233 {offsets = [0, 0], sizes = [8, 128], strides = [1, 1]} : vector<8x256xf32> to vector<8x128xf32>
    %236 = arith.addf %234, %235 : vector<8x128xf32>
    %237 = arith.negf %236 : vector<8x128xf32>
    %238 = math.exp %237 : vector<8x128xf32>
    %cst_65 = arith.constant 1.000000e+00 : f32
    %239 = vector.broadcast %cst_65 : f32 to vector<8x128xf32>
    %240 = arith.addf %239, %238 : vector<8x128xf32>
    %241 = arith.divf %239, %240 : vector<8x128xf32>
    %242 = vector.extract_strided_slice %232 {offsets = [0, 128], sizes = [8, 128], strides = [1, 1]} : vector<8x384xf32> to vector<8x128xf32>
    %243 = vector.extract_strided_slice %233 {offsets = [0, 128], sizes = [8, 128], strides = [1, 1]} : vector<8x256xf32> to vector<8x128xf32>
    %244 = arith.addf %242, %243 : vector<8x128xf32>
    %245 = arith.negf %244 : vector<8x128xf32>
    %246 = math.exp %245 : vector<8x128xf32>
    %cst_66 = arith.constant 1.000000e+00 : f32
    %247 = vector.broadcast %cst_66 : f32 to vector<8x128xf32>
    %248 = arith.addf %247, %246 : vector<8x128xf32>
    %249 = arith.divf %247, %248 : vector<8x128xf32>
    %250 = vector.extract_strided_slice %232 {offsets = [0, 256], sizes = [8, 128], strides = [1, 1]} : vector<8x384xf32> to vector<8x128xf32>
    %251 = arith.mulf %241, %225 : vector<8x128xf32>
    %cst_67 = arith.constant dense<0.000000e+00> : vector<8x128xf32>
    %252 = tpu.matmul %251, %4, %cst_67 {dimension_numbers = #tpu.dot_dimension_numbers<[1], [0], [0], [1], [0, 0, 1, 1], [], []>} : vector<8x128xf32>, vector<128x128xf32>, vector<8x128xf32> -> vector<8x128xf32>
    %253 = arith.addf %250, %252 : vector<8x128xf32>
    %254 = math.tanh %253 : vector<8x128xf32>
    %255 = arith.subf %254, %225 : vector<8x128xf32>
    %256 = arith.mulf %249, %255 : vector<8x128xf32>
    %257 = arith.addf %225, %256 : vector<8x128xf32>
    %258 = arith.index_cast %c7_i32 : i32 to index
    %c0_68 = arith.constant 0 : index
    %c0_69 = arith.constant 0 : index
    %259 = vector.load %arg4[%258, %c0_68, %c0_69] : memref<8x8x128xf32, #tpu.memory_space<vmem>>, vector<1x8x128xf32>
    %260 = vector.shape_cast %259 : vector<1x8x128xf32> to vector<8x128xf32>
    %261 = vector.shape_cast %257 : vector<8x128xf32> to vector<1x8x128xf32>
    tpu.vector_store %arg4[%258, %c0_68, %c0_69], %261 {strides = array<i32>} : memref<8x8x128xf32, #tpu.memory_space<vmem>>, vector<1x8x128xf32>,
    %c8_i32 = arith.constant 8 : i32
    %c0_70 = arith.constant 0 : index
    %c0_71 = arith.constant 0 : index
    %262 = vector.load %arg5[%c0_70, %c0_71] : memref<8x128xf32, #tpu.memory_space<vmem>>, vector<8x128xf32>
    tpu.vector_store %arg5[%c0_70, %c0_71], %257 {strides = array<i32>} : memref<8x128xf32, #tpu.memory_space<vmem>>, vector<8x128xf32>,
    return
  }
  func.func @transform_0(%arg0: i32) -> (i32, i32, i32) {
    %c0_i32 = arith.constant 0 : i32
    %c0_i32_0 = arith.constant 0 : i32
    %c0_i32_1 = arith.constant 0 : i32
    return %arg0, %c0_i32, %c0_i32_0 : i32, i32, i32
  }
  func.func @transform_1(%arg0: i32) -> (i32, i32) {
    %c0_i32 = arith.constant 0 : i32
    %c0_i32_0 = arith.constant 0 : i32
    %c0_i32_1 = arith.constant 0 : i32
    return %c0_i32, %c0_i32_0 : i32, i32
  }
  func.func @transform_2(%arg0: i32) -> (i32, i32) {
    %c0_i32 = arith.constant 0 : i32
    %c0_i32_0 = arith.constant 0 : i32
    %c0_i32_1 = arith.constant 0 : i32
    return %c0_i32, %c0_i32_0 : i32, i32
  }
  func.func @transform_3(%arg0: i32) -> (i32, i32, i32) {
    %c0_i32 = arith.constant 0 : i32
    %c0_i32_0 = arith.constant 0 : i32
    %c0_i32_1 = arith.constant 0 : i32
    return %arg0, %c0_i32, %c0_i32_0 : i32, i32, i32
  }
}

</mosaic_0001>

<bundles_post_ra>
// kernel: tpu_custom_call.1
= control target key start
LH: loop header
LB: loop body
LE: loop exit
PB: predicated region body
PF: predicated region fallthrough
CT: control target
= control target key end

     0   :  { %8 = vsyncpa [#allocation4], 0  ;;  %s2988_s0 = inlined_call_operand.hbm [shape: f32[8,8,384], index: 0, kind: input, shape index: {}]   ;;  %s2989_s1 = inlined_call_operand.hbm [shape: f32[128,256], index: 1, kind: input, shape index: {}]   ;;  %s2990_s2 = inlined_call_operand.hbm [shape: f32[128,128], index: 2, kind: input, shape index: {}]   ;;  %s2991_s3 = inlined_call_operand.hbm [shape: f32[8,8,128], index: 3, kind: output, shape index: {}]  }
   0x1   :  { %9 = vsyncpa [#allocation7], 0 }
   0x2   :  { %10 = vsyncpa [#allocation5], 0  ;;  %s2530_s12 = smov [#allocation6]   ;;  %s2436_s16 = scalar_lea.hbm %s2989_s1, 4096 }
   0x3   :  { %s28_s13 = sshll.u32 %s2530_s12, 4  ;;  %p2437_p0 = scmp.ne.s32.totalorder %s2989_s1, %s2436_s16  ;;  %s29_s13 = int_to_ptr.vmem [resolvable:$true] %s28_s13 }
   0x4   :  { %p2440_p1 = scmp.lt.u32.totalorder %s2436_s16, %s2989_s1 }
   0x6   :  { %p2442_p2 = pnand %p2440_p1, %p2437_p0 }
   0x8   :  { %2445 = shalt.err (!%p2442_p2)
}
   0x9   :  { %s2446_s21 = scalar_lea.vmem %s29_s13, 4096  ;;  %p2451_p4 = scmp.lt.s32.totalorder %s29_s13, %s29_s13 }
   0xa   :  { %p2447_p3 = scmp.ne.s32.totalorder %s29_s13, %s2446_s21  ;;  %p2452_p5 = scmp.lt.s32.totalorder %s2446_s21, %s2446_s21 }
   0xc   :  { %p2453_p6 = por %p2452_p5, %p2451_p4 }
   0xe   :  { %p2454_p7 = pnand %p2453_p6, %p2447_p3 }
  0x10   :  { %2457 = shalt.err (!%p2454_p7)
}
  0x11   :  { %s2531_s22 = smov 256   ;;  %s2532_s23 = smov 16  }
  0x12   :  { %34 = dma.hbm_to_vmem [thread:$0]  %s2989_s1, 4096, %s29_s13, [#allocation7], %s2531_s22, %s2531_s22, %s2532_s23  }
  0x13   :  { %s2533_s26 = smov [#allocation3]   ;;  %s2458_s30 = scalar_lea.hbm %s2988_s0, 3072 }
  0x14   :  { %s16_s27 = sshll.u32 %s2533_s26, 4  ;;  %p2459_p8 = scmp.ne.s32.totalorder %s2988_s0, %s2458_s30  ;;  %s17_s27 = int_to_ptr.vmem [resolvable:$true] %s16_s27 }
  0x15   :  { %p2462_p9 = scmp.lt.u32.totalorder %s2458_s30, %s2988_s0 }
  0x17   :  { %p2464_p10 = pnand %p2462_p9, %p2459_p8 }
  0x19   :  { %2467 = shalt.err (!%p2464_p10)
}
  0x1a   :  { %s2468_s8 = scalar_lea.vmem %s17_s27, 3072  ;;  %p2473_p12 = scmp.lt.s32.totalorder %s17_s27, %s17_s27 }
  0x1b   :  { %p2469_p11 = scmp.ne.s32.totalorder %s17_s27, %s2468_s8  ;;  %p2474_p13 = scmp.lt.s32.totalorder %s2468_s8, %s2468_s8 }
  0x1d   :  { %p2475_p0 = por %p2474_p13, %p2473_p12 }
  0x1f   :  { %p2476_p1 = pnand %p2475_p0, %p2469_p11 }
  0x21   :  { %2479 = shalt.err (!%p2476_p1)
}
  0x22   :  { %s2534_s1 = smov 384   ;;  %s2535_s9 = smov 24  }
  0x23   :  { %22 = dma.hbm_to_vmem [thread:$0]  %s2988_s0, 3072, %s17_s27, [#allocation4], %s2534_s1, %s2534_s1, %s2535_s9  }
  0x24   :  { %s2536_s12 = smov [#allocation8]   ;;  %s2480_s16 = scalar_lea.hbm %s2990_s2, 2048 }
  0x25   :  { %s40_s13 = sshll.u32 %s2536_s12, 4  ;;  %p2481_p2 = scmp.ne.s32.totalorder %s2990_s2, %s2480_s16  ;;  %s41_s13 = int_to_ptr.vmem [resolvable:$true] %s40_s13 }
  0x26   :  { %p2484_p3 = scmp.lt.u32.totalorder %s2480_s16, %s2990_s2 }
  0x28   :  { %p2486_p4 = pnand %p2484_p3, %p2481_p2 }
  0x2a   :  { %2489 = shalt.err (!%p2486_p4)
}
  0x2b   :  { %s2490_s21 = scalar_lea.vmem %s41_s13, 2048  ;;  %p2495_p6 = scmp.lt.s32.totalorder %s41_s13, %s41_s13 }
  0x2c   :  { %p2491_p5 = scmp.ne.s32.totalorder %s41_s13, %s2490_s21  ;;  %p2496_p7 = scmp.lt.s32.totalorder %s2490_s21, %s2490_s21 }
  0x2e   :  { %p2497_p8 = por %p2496_p7, %p2495_p6 }
  0x30   :  { %p2498_p9 = pnand %p2497_p8, %p2491_p5 }
  0x32   :  { %2501 = shalt.err (!%p2498_p9)
}
  0x33   :  { %s2537_s0 = smov 128   ;;  %s2538_s22 = smov 8  }
  0x34   :  { %46 = dma.hbm_to_vmem [thread:$0]  %s2990_s2, 2048, %s41_s13, [#allocation7], %s2537_s0, %s2537_s0, %s2538_s22  }
  0x35   :  { %2524 = dma.done.wait [#allocation4], 3072  }
  0x36   :  { %2525 = vsyncadd [#allocation4], 4294964224 }
  0x37   :  { %2526 = dma.done.wait [#allocation7], 6144  }
  0x38   :  { %2527 = vsyncadd [#allocation7], 4294961152  ;;  %v2539_v0 = vmov 0.0   ;;  %v2540_v1 = vmov 0.0|0.0   ;;  %v62_v2 = vld [vmem:[#allocation6 + $0x8] sm:$0xff]  ;;  %v64_v3 = vld [vmem:[#allocation6 + $0x18] sm:$0xff] }
  0x39   :  { %177 = vmatprep.mubr.f32.mxu0 %v2539_v0  ;;  %1927 = vmatprep.subr.bf16.mxu1 %v2540_v1  ;;  %v61_v4 = vld [vmem:[#allocation6] sm:$0xff]  ;;  %v2604_v5 = vpack.c.bf16 %v64_v3, %v62_v2  ;;  %v63_v6 = vld [vmem:[#allocation6 + $0x10] sm:$0xff]  ;;  %v66_v7 = vld [vmem:[#allocation6 + $0x28] sm:$0xff]  ;;  %vm2541_vm0 = vmmov 0   ;;  %s2542_s2 = smov [#allocation9]  }
  0x3a   :  { %v68_v8 = vld [vmem:[#allocation6 + $0x38] sm:$0xff]  ;;  %v2606_v9 = vpack.c.bf16 %v63_v6, %v61_v4  ;;  %v65_v11 = vld [vmem:[#allocation6 + $0x20] sm:$0xff]  ;;  %v67_v12 = vld [vmem:[#allocation6 + $0x30] sm:$0xff]  ;;  %1647 = vmatprep.mubr.msk.f32.mxu1 %vm2541_vm0, %v2539_v0  ;;  %s1450_s25 = sshll.u32 %s2542_s2, 4  ;;  %s1451_s25 = int_to_ptr.vmem [resolvable:$true] %s1450_s25 }
  0x3b   :  { %v2608_v10 = vpack.c.bf16 %v68_v8, %v66_v7  ;;  %v70_v13 = vld [vmem:[#allocation6 + $0x48] sm:$0xff]  ;;  %1896 = vmatprep.subr.bf16.mxu0 %v2604_v5  ;;  %v72_v14 = vld [vmem:[#allocation6 + $0x58] sm:$0xff]  ;;  %v2612_v15 = vpack.c.bf16 %v67_v12, %v65_v11  ;;  %v69_v17 = vld [vmem:[#allocation6 + $0x40] sm:$0xff]  ;;  %s2502_s26 = scalar_lea.vmem %s1451_s25, 1024  ;;  %p2507_p11 = scmp.lt.s32.totalorder %s1451_s25, %s1451_s25 }
  0x3c   :  { %1898 = vmatpush1.bf16.msra.mxu0 %v2606_v9  ;;  %v2615_v16 = vpack.c.bf16 %v72_v14, %v70_v13  ;;  %v71_v18 = vld [vmem:[#allocation6 + $0x50] sm:$0xff]  ;;  %v74_v19 = vld [vmem:[#allocation6 + $0x68] sm:$0xff]  ;;  %v76_v20 = vld [vmem:[#allocation6 + $0x78] sm:$0xff]  ;;  %p2503_p10 = scmp.ne.s32.totalorder %s1451_s25, %s2502_s26  ;;  %p2508_p12 = scmp.lt.s32.totalorder %s2502_s26, %s2502_s26 }
  0x3d   :  { %1900 = vmatprep.subr.bf16.mxu0 %v2608_v10  ;;  %v2618_v21 = vpack.c.bf16 %v71_v18, %v69_v17  ;;  %v2621_v22 = vpack.c.bf16 %v76_v20, %v74_v19  ;;  %v73_v23 = vld [vmem:[#allocation6 + $0x60] sm:$0xff]  ;;  %v75_v24 = vld [vmem:[#allocation6 + $0x70] sm:$0xff]  ;;  %v78_v25 = vld [vmem:[#allocation6 + $0x88] sm:$0xff] }
  0x3e   :  { %v80_v26 = vld [vmem:[#allocation6 + $0x98] sm:$0xff]  ;;  %v2624_v27 = vpack.c.bf16 %v75_v24, %v73_v23  ;;  %v77_v29 = vld [vmem:[#allocation6 + $0x80] sm:$0xff]  ;;  %v79_v30 = vld [vmem:[#allocation6 + $0x90] sm:$0xff]  ;;  %p2509_p13 = por %p2508_p12, %p2507_p11 }
  0x3f   :  { %v2627_v28 = vpack.c.bf16 %v80_v26, %v78_v25  ;;  %v82_v31 = vld [vmem:[#allocation6 + $0xa8] sm:$0xff]  ;;  %v84_v32 = vld [vmem:[#allocation6 + $0xb8] sm:$0xff]  ;;  %v2630_v33 = vpack.c.bf16 %v79_v30, %v77_v29  ;;  %v81_v35 = vld [vmem:[#allocation6 + $0xa0] sm:$0xff] }
  0x40   :  { %1902 = vmatpush1.bf16.msra.mxu0 %v2612_v15  ;;  %v2633_v34 = vpack.c.bf16 %v84_v32, %v82_v31  ;;  %v83_v36 = vld [vmem:[#allocation6 + $0xb0] sm:$0xff]  ;;  %v86_v37 = vld [vmem:[#allocation6 + $0xc8] sm:$0xff]  ;;  %v88_v38 = vld [vmem:[#allocation6 + $0xd8] sm:$0xff]  ;;  %p2510_p0 = pnand %p2509_p13, %p2503_p10 }
  0x41   :  { %1904 = vmatprep.subr.bf16.mxu0 %v2615_v16  ;;  %v2636_v39 = vpack.c.bf16 %v83_v36, %v81_v35  ;;  %v2639_v40 = vpack.c.bf16 %v88_v38, %v86_v37  ;;  %v85_v41 = vld [vmem:[#allocation6 + $0xc0] sm:$0xff]  ;;  %v87_v42 = vld [vmem:[#allocation6 + $0xd0] sm:$0xff]  ;;  %v90_v43 = vld [vmem:[#allocation6 + $0xe8] sm:$0xff] }
  0x42   :  { %v92_v44 = vld [vmem:[#allocation6 + $0xf8] sm:$0xff]  ;;  %v2642_v45 = vpack.c.bf16 %v87_v42, %v85_v41  ;;  %v89_v47 = vld [vmem:[#allocation6 + $0xe0] sm:$0xff]  ;;  %v91_v48 = vld [vmem:[#allocation6 + $0xf0] sm:$0xff] }
  0x43   :  { %v2645_v46 = vpack.c.bf16 %v92_v44, %v90_v43  ;;  %v2648_v49 = vpack.c.bf16 %v91_v48, %v89_v47  ;;  %v93_v50 = vld [vmem:[#allocation8] sm:$0xff]  ;;  %v94_v51 = vld [vmem:[#allocation8 + $0x8] sm:$0xff]  ;;  %v95_v53 = vld [vmem:[#allocation8 + $0x10] sm:$0xff] }
  0x44   :  { %1906 = vmatpush1.bf16.msra.mxu0 %v2618_v21  ;;  %v2671_v52 = vpack.c.bf16 %v94_v51, %v93_v50  ;;  %v96_v54 = vld [vmem:[#allocation8 + $0x18] sm:$0xff]  ;;  %v97_v56 = vld [vmem:[#allocation8 + $0x20] sm:$0xff]  ;;  %v98_v57 = vld [vmem:[#allocation8 + $0x28] sm:$0xff] }
  0x45   :  { %1908 = vmatprep.subr.bf16.mxu0 %v2621_v22  ;;  %v2675_v55 = vpack.c.bf16 %v96_v54, %v95_v53  ;;  %v2679_v58 = vpack.c.bf16 %v98_v57, %v97_v56  ;;  %v99_v59 = vld [vmem:[#allocation8 + $0x30] sm:$0xff]  ;;  %v100_v60 = vld [vmem:[#allocation8 + $0x38] sm:$0xff]  ;;  %v101_v62 = vld [vmem:[#allocation8 + $0x40] sm:$0xff] }
  0x46   :  { %1929 = vmatpush3.bf16.msra.mxu1 %v2671_v52  ;;  %v2683_v61 = vpack.c.bf16 %v100_v60, %v99_v59  ;;  %v102_v63 = vld [vmem:[#allocation8 + $0x48] sm:$0xff]  ;;  %v103_v3 = vld [vmem:[#allocation8 + $0x50] sm:$0xff]  ;;  %v104_v4 = vld [vmem:[#allocation8 + $0x58] sm:$0xff] }
  0x47   :  { %1930 = vmatprep.subr.bf16.mxu1 %v2540_v1  ;;  %v2687_v2 = vpack.c.bf16 %v102_v63, %v101_v62  ;;  %v2691_v6 = vpack.c.bf16 %v104_v4, %v103_v3  ;;  %v105_v7 = vld [vmem:[#allocation8 + $0x60] sm:$0xff]  ;;  %v106_v8 = vld [vmem:[#allocation8 + $0x68] sm:$0xff]  ;;  %v107_v12 = vld [vmem:[#allocation8 + $0x70] sm:$0xff] }
  0x48   :  { %1910 = vmatpush1.bf16.msra.mxu0 %v2624_v27  ;;  %v2694_v11 = vpack.c.bf16 %v106_v8, %v105_v7  ;;  %v108_v13 = vld [vmem:[#allocation8 + $0x78] sm:$0xff]  ;;  %v110_v17 = vld [vmem:[#allocation3] sm:$0xff]  ;;  %v111_v30 = vld [vmem:[#allocation3 + $0x8] sm:$0xff] }
  0x49   :  { %1912 = vmatprep.subr.bf16.mxu0 %v2627_v28  ;;  %v2700_v14 = vpack.c.bf16 %v108_v13, %v107_v12  ;;  %v112_v37 = vld [vmem:[#allocation3 + $0x10] sm:$0xff]  ;;  %v276_v48 = vld [vmem:[#allocation3 + $0x18] sm:$0xff]  ;;  %v277_v62 = vld [vmem:[#allocation3 + $0x20] sm:$0xff] }
  0x4a   :  { %1932 = vmatpush3.bf16.msra.mxu1 %v2675_v55  ;;  %v278_v7 = vld [vmem:[#allocation3 + $0x28] sm:$0xff] }
  0x4b   :  { %1933 = vmatprep.subr.bf16.mxu1 %v2540_v1 }
  0x4c   :  { %1914 = vmatpush1.bf16.msra.mxu0 %v2630_v33 }
  0x4d   :  { %1916 = vmatprep.subr.bf16.mxu0 %v2633_v34 }
  0x4e   :  { %1935 = vmatpush3.bf16.msra.mxu1 %v2679_v58 }
  0x4f   :  { %1936 = vmatprep.subr.bf16.mxu1 %v2540_v1 }
  0x50   :  { %1918 = vmatpush1.bf16.msra.mxu0 %v2636_v39 }
  0x51   :  { %1920 = vmatprep.subr.bf16.mxu0 %v2639_v40 }
  0x52   :  { %1938 = vmatpush3.bf16.msra.mxu1 %v2683_v61 }
  0x53   :  { %1939 = vmatprep.subr.bf16.mxu1 %v2540_v1 }
  0x54   :  { %1922 = vmatpush1.bf16.msra.mxu0 %v2642_v45 }
  0x55   :  { %1924 = vmatprep.subr.bf16.mxu0 %v2645_v46 }
  0x56   :  { %1941 = vmatpush3.bf16.msra.mxu1 %v2687_v2 }
  0x57   :  { %1942 = vmatprep.subr.bf16.mxu1 %v2540_v1 }
  0x58   :  { %1926 = vmatpush1.bf16.msra.mxu0 %v2648_v49 }
  0x59   :  { %1952 = vmatprep.subr.bf16.mxu0 %v2604_v5 }
  0x5a   :  { %1944 = vmatpush3.bf16.msra.mxu1 %v2691_v6 }
  0x5b   :  { %178 = vmatmul.mubr.f32.vlgmr.msra.gmra.mrb[0].mxu0 %v2539_v0  ;;  %1945 = vmatprep.subr.bf16.mxu1 %v2540_v1 }
  0x5c   :  { %1954 = vmatpush1.bf16.msra.mxu0 %v2606_v9  ;;  %343 = vmatprep.mubr.f32.mxu0 %v2539_v0 }
  0x5d   :  { %1956 = vmatprep.subr.bf16.mxu0 %v2608_v10 }
  0x5e   :  { %1947 = vmatpush3.bf16.msra.mxu1 %v2694_v11 }
  0x5f   :  { %1948 = vmatprep.subr.bf16.mxu1 %v2540_v1 }
  0x60   :  { %1958 = vmatpush1.bf16.msra.mxu0 %v2612_v15 }
  0x61   :  { %1960 = vmatprep.subr.bf16.mxu0 %v2615_v16 }
  0x62   :  { %1950 = vmatpush3.bf16.msra.mxu1 %v2700_v14 }
  0x63   :  { %1983 = vmatprep.subr.bf16.mxu1 %v2540_v1 }
  0x64   :  { %1962 = vmatpush1.bf16.msra.mxu0 %v2618_v21 }
  0x65   :  { %1964 = vmatprep.subr.bf16.mxu0 %v2621_v22 }
  0x68   :  { %1966 = vmatpush1.bf16.msra.mxu0 %v2624_v27 }
  0x69   :  { %1968 = vmatprep.subr.bf16.mxu0 %v2627_v28 }
  0x6c   :  { %1970 = vmatpush1.bf16.msra.mxu0 %v2630_v33 }
  0x6d   :  { %1972 = vmatprep.subr.bf16.mxu0 %v2633_v34 }
  0x70   :  { %1974 = vmatpush1.bf16.msra.mxu0 %v2636_v39 }
  0x71   :  { %1976 = vmatprep.subr.bf16.mxu0 %v2639_v40 }
  0x74   :  { %1978 = vmatpush1.bf16.msra.mxu0 %v2642_v45 }
  0x75   :  { %1980 = vmatprep.subr.bf16.mxu0 %v2645_v46 }
  0x78   :  { %1982 = vmatpush1.bf16.msra.mxu0 %v2648_v49 }
  0x79   :  { %2008 = vmatprep.subr.bf16.mxu0 %v2604_v5 }
 0x12e   :  { %v179_v18 = vpop.f32.mrb[0].mxu0 }
 0x12f   :  { %v184_v19 = vadd.f32 %v179_v18, %v110_v17  ;;  %v181_v20 = vpop.f32.mrb[1].mxu0 }
 0x130   :  { %v191_v31 = vadd.f32 %v181_v20, %v111_v30 }
 0x131   :  { %v1463_v23 = vmul.f32 -1.442695, %v184_v19 }
 0x132   :  { %v1464_v32 = vmul.f32 -1.442695, %v191_v31 }
 0x133   :  { %2356 = vpow2.f32 %v1463_v23 }
 0x13d   :  { %v2357_v24 = vpop.eup %2356 }
 0x13e   :  { %v188_v25 = vadd.f32 1.0, %v2357_v24 }
 0x140   :  { %2358 = vrcp.f32 %v188_v25  ;;  %v443_v25 = vld [vmem:[#allocation3 + $0x30] sm:$0xff] }
 0x141   :  { %2360 = vpow2.f32 %v1464_v32 }
 0x14a   :  { %v2359_v26 = vpop.eup %2358 }
 0x14b   :  { %v198_v29 = vmul.f32 0.0, %v2359_v26  ;;  %v2361_v35 = vpop.eup %2360 }
 0x14c   :  { %v195_v36 = vadd.f32 1.0, %v2361_v35 }
 0x14d   :  { %1648 = vmatmul.mubr.f32.vlgmr.msra.gmra.mrb[0].mxu1 %v198_v29 }
 0x14e   :  { %1985 = vmatpush3.bf16.msra.mxu1 %v2671_v52  ;;  %1682 = vmatprep.mubr.msk.f32.mxu1 %vm2541_vm0, %v2539_v0  ;;  %2362 = vrcp.f32 %v195_v36 }
 0x14f   :  { %1986 = vmatprep.subr.bf16.mxu1 %v2540_v1 }
 0x152   :  { %1988 = vmatpush3.bf16.msra.mxu1 %v2675_v55 }
 0x153   :  { %1989 = vmatprep.subr.bf16.mxu1 %v2540_v1 }
 0x156   :  { %1991 = vmatpush3.bf16.msra.mxu1 %v2679_v58 }
 0x157   :  { %1992 = vmatprep.subr.bf16.mxu1 %v2540_v1 }
 0x158   :  { %v2363_v43 = vpop.eup %2362 }
 0x15a   :  { %1994 = vmatpush3.bf16.msra.mxu1 %v2683_v61 }
 0x15b   :  { %1995 = vmatprep.subr.bf16.mxu1 %v2540_v1 }
 0x15e   :  { %1997 = vmatpush3.bf16.msra.mxu1 %v2687_v2 }
 0x15f   :  { %1998 = vmatprep.subr.bf16.mxu1 %v2540_v1 }
 0x162   :  { %2000 = vmatpush3.bf16.msra.mxu1 %v2691_v6 }
 0x163   :  { %2001 = vmatprep.subr.bf16.mxu1 %v2540_v1 }
 0x166   :  { %2003 = vmatpush3.bf16.msra.mxu1 %v2694_v11 }
 0x167   :  { %2004 = vmatprep.subr.bf16.mxu1 %v2540_v1 }
 0x16a   :  { %2006 = vmatpush3.bf16.msra.mxu1 %v2700_v14 }
 0x16b   :  { %2039 = vmatprep.subr.bf16.mxu1 %v2540_v1 }
 0x220   :  { %v265_v38 = vpop.f32.mrb[0].mxu1 }
 0x221   :  { %v269_v41 = vadd.f32 %v265_v38, %v112_v37  ;;  %v1649_v42 = vpop.f32.mrb[1].mxu1  ;;  %v444_v38 = vld [vmem:[#allocation3 + $0x38] sm:$0xff] }
 0x223   :  { %2364 = vtanh.f32 %v269_v41 }
 0x22d   :  { %v2365_v44 = vpop.eup %2364 }
 0x22e   :  { %v2723_v47 = vmul.f32 %v2365_v44, %v2363_v43  ;;  %v445_v44 = vld [vmem:[#allocation3 + $0x40] sm:$0xff] }
 0x230   :  { %344 = vmatmul.mubr.f32.vlgmr.msra.gmra.mrb[2].mxu0 %v2723_v47  ;;  %274 = vst [vmem:[#allocation9] sm:$0xff] %v2723_v47 }
 0x231   :  { %2010 = vmatpush1.bf16.msra.mxu0 %v2606_v9  ;;  %510 = vmatprep.mubr.f32.mxu0 %v2539_v0 }
 0x232   :  { %2012 = vmatprep.subr.bf16.mxu0 %v2608_v10 }
 0x235   :  { %2014 = vmatpush1.bf16.msra.mxu0 %v2612_v15 }
 0x236   :  { %2016 = vmatprep.subr.bf16.mxu0 %v2615_v16 }
 0x239   :  { %2018 = vmatpush1.bf16.msra.mxu0 %v2618_v21 }
 0x23a   :  { %2020 = vmatprep.subr.bf16.mxu0 %v2621_v22 }
 0x23d   :  { %2022 = vmatpush1.bf16.msra.mxu0 %v2624_v27 }
 0x23e   :  { %2024 = vmatprep.subr.bf16.mxu0 %v2627_v28 }
 0x241   :  { %2026 = vmatpush1.bf16.msra.mxu0 %v2630_v33 }
 0x242   :  { %2028 = vmatprep.subr.bf16.mxu0 %v2633_v34 }
 0x245   :  { %2030 = vmatpush1.bf16.msra.mxu0 %v2636_v39 }
 0x246   :  { %2032 = vmatprep.subr.bf16.mxu0 %v2639_v40 }
 0x249   :  { %2034 = vmatpush1.bf16.msra.mxu0 %v2642_v45 }
 0x24a   :  { %2036 = vmatprep.subr.bf16.mxu0 %v2645_v46 }
 0x24d   :  { %2038 = vmatpush1.bf16.msra.mxu0 %v2648_v49 }
 0x24e   :  { %2064 = vmatprep.subr.bf16.mxu0 %v2604_v5 }
 0x303   :  { %v345_v50 = vpop.f32.mrb[2].mxu0 }
 0x304   :  { %v350_v51 = vadd.f32 %v345_v50, %v276_v48  ;;  %v347_v53 = vpop.f32.mrb[3].mxu0 }
 0x305   :  { %v357_v63 = vadd.f32 %v347_v53, %v277_v62 }
 0x306   :  { %v1465_v54 = vmul.f32 -1.442695, %v350_v51 }
 0x307   :  { %v1466_v3 = vmul.f32 -1.442695, %v357_v63 }
 0x308   :  { %2366 = vpow2.f32 %v1465_v54 }
 0x312   :  { %v2367_v56 = vpop.eup %2366 }
 0x313   :  { %v354_v57 = vadd.f32 1.0, %v2367_v56 }
 0x315   :  { %2368 = vrcp.f32 %v354_v57 }
 0x316   :  { %2370 = vpow2.f32 %v1466_v3 }
 0x31f   :  { %v2369_v59 = vpop.eup %2368 }
 0x320   :  { %v364_v60 = vmul.f32 %v2369_v59, %v2723_v47  ;;  %v2371_v4 = vpop.eup %2370 }
 0x321   :  { %v361_v12 = vadd.f32 1.0, %v2371_v4 }
 0x322   :  { %1683 = vmatmul.mubr.f32.vlgmr.msra.gmra.mrb[2].mxu1 %v364_v60  ;;  %v610_v60 = vld [vmem:[#allocation3 + $0x48] sm:$0xff] }
 0x323   :  { %2041 = vmatpush3.bf16.msra.mxu1 %v2671_v52  ;;  %1717 = vmatprep.mubr.msk.f32.mxu1 %vm2541_vm0, %v2539_v0 }
 0x324   :  { %2042 = vmatprep.subr.bf16.mxu1 %v2540_v1 }
 0x327   :  { %2044 = vmatpush3.bf16.msra.mxu1 %v2675_v55 }
 0x328   :  { %2045 = vmatprep.subr.bf16.mxu1 %v2540_v1 }
 0x32b   :  { %2047 = vmatpush3.bf16.msra.mxu1 %v2679_v58 }
 0x32c   :  { %2048 = vmatprep.subr.bf16.mxu1 %v2540_v1 }
 0x32f   :  { %2050 = vmatpush3.bf16.msra.mxu1 %v2683_v61 }
 0x330   :  { %2051 = vmatprep.subr.bf16.mxu1 %v2540_v1 }
 0x333   :  { %2053 = vmatpush3.bf16.msra.mxu1 %v2687_v2 }
 0x334   :  { %2054 = vmatprep.subr.bf16.mxu1 %v2540_v1 }
 0x337   :  { %2056 = vmatpush3.bf16.msra.mxu1 %v2691_v6 }
 0x338   :  { %2057 = vmatprep.subr.bf16.mxu1 %v2540_v1 }
 0x33b   :  { %2059 = vmatpush3.bf16.msra.mxu1 %v2694_v11 }
 0x33c   :  { %2060 = vmatprep.subr.bf16.mxu1 %v2540_v1 }
 0x33f   :  { %2062 = vmatpush3.bf16.msra.mxu1 %v2700_v14 }
 0x340   :  { %2095 = vmatprep.subr.bf16.mxu1 %v2540_v1 }
 0x3f5   :  { %v431_v8 = vpop.f32.mrb[2].mxu1 }
 0x3f6   :  { %v435_v13 = vadd.f32 %v431_v8, %v278_v7  ;;  %v1684_v17 = vpop.f32.mrb[3].mxu1 }
 0x3f7   :  { %v611_v17 = vld [vmem:[#allocation3 + $0x50] sm:$0xff] }
 0x3f8   :  { %2372 = vtanh.f32 %v435_v13 }
 0x3f9   :  { %2374 = vrcp.f32 %v361_v12 }
 0x402   :  { %v2373_v18 = vpop.eup %2372 }
 0x403   :  { %v437_v19 = vsub.f32 %v2373_v18, %v2723_v47  ;;  %v2375_v20 = vpop.eup %2374 }
 0x405   :  { %v438_v23 = vmul.f32 %v2375_v20, %v437_v19 }
 0x407   :  { %v2765_v24 = vadd.f32 %v438_v23, %v2723_v47  ;;  %v612_v23 = vld [vmem:[#allocation3 + $0x58] sm:$0xff] }
 0x409   :  { %511 = vmatmul.mubr.f32.vlgmr.msra.gmra.mrb[4].mxu0 %v2765_v24  ;;  %441 = vst [vmem:[#allocation9 + $0x8] sm:$0xff] %v2765_v24 }
 0x40a   :  { %2066 = vmatpush1.bf16.msra.mxu0 %v2606_v9  ;;  %677 = vmatprep.mubr.f32.mxu0 %v2539_v0 }
 0x40b   :  { %2068 = vmatprep.subr.bf16.mxu0 %v2608_v10 }
 0x40e   :  { %2070 = vmatpush1.bf16.msra.mxu0 %v2612_v15 }
 0x40f   :  { %2072 = vmatprep.subr.bf16.mxu0 %v2615_v16 }
 0x412   :  { %2074 = vmatpush1.bf16.msra.mxu0 %v2618_v21 }
 0x413   :  { %2076 = vmatprep.subr.bf16.mxu0 %v2621_v22 }
 0x416   :  { %2078 = vmatpush1.bf16.msra.mxu0 %v2624_v27 }
 0x417   :  { %2080 = vmatprep.subr.bf16.mxu0 %v2627_v28 }
 0x41a   :  { %2082 = vmatpush1.bf16.msra.mxu0 %v2630_v33 }
 0x41b   :  { %2084 = vmatprep.subr.bf16.mxu0 %v2633_v34 }
 0x41e   :  { %2086 = vmatpush1.bf16.msra.mxu0 %v2636_v39 }
 0x41f   :  { %2088 = vmatprep.subr.bf16.mxu0 %v2639_v40 }
 0x422   :  { %2090 = vmatpush1.bf16.msra.mxu0 %v2642_v45 }
 0x423   :  { %2092 = vmatprep.subr.bf16.mxu0 %v2645_v46 }
 0x426   :  { %2094 = vmatpush1.bf16.msra.mxu0 %v2648_v49 }
 0x427   :  { %2120 = vmatprep.subr.bf16.mxu0 %v2604_v5 }
 0x4dc   :  { %v512_v26 = vpop.f32.mrb[4].mxu0 }
 0x4dd   :  { %v517_v29 = vadd.f32 %v512_v26, %v443_v25  ;;  %v514_v30 = vpop.f32.mrb[5].mxu0 }
 0x4de   :  { %v524_v41 = vadd.f32 %v514_v30, %v444_v38 }
 0x4df   :  { %v1467_v31 = vmul.f32 -1.442695, %v517_v29 }
 0x4e0   :  { %v1468_v42 = vmul.f32 -1.442695, %v524_v41 }
 0x4e1   :  { %2376 = vpow2.f32 %v1467_v31 }
 0x4eb   :  { %v2377_v32 = vpop.eup %2376 }
 0x4ec   :  { %v521_v35 = vadd.f32 1.0, %v2377_v32 }
 0x4ee   :  { %2378 = vrcp.f32 %v521_v35 }
 0x4ef   :  { %2380 = vpow2.f32 %v1468_v42 }
 0x4f8   :  { %v2379_v36 = vpop.eup %2378 }
 0x4f9   :  { %v531_v37 = vmul.f32 %v2379_v36, %v2765_v24  ;;  %v2381_v43 = vpop.eup %2380 }
 0x4fa   :  { %v528_v48 = vadd.f32 1.0, %v2381_v43 }
 0x4fb   :  { %1718 = vmatmul.mubr.f32.vlgmr.msra.gmra.mrb[4].mxu1 %v531_v37  ;;  %v777_v37 = vld [vmem:[#allocation3 + $0x60] sm:$0xff] }
 0x4fc   :  { %2097 = vmatpush3.bf16.msra.mxu1 %v2671_v52  ;;  %1752 = vmatprep.mubr.msk.f32.mxu1 %vm2541_vm0, %v2539_v0 }
 0x4fd   :  { %2098 = vmatprep.subr.bf16.mxu1 %v2540_v1 }
 0x500   :  { %2100 = vmatpush3.bf16.msra.mxu1 %v2675_v55 }
 0x501   :  { %2101 = vmatprep.subr.bf16.mxu1 %v2540_v1 }
 0x504   :  { %2103 = vmatpush3.bf16.msra.mxu1 %v2679_v58 }
 0x505   :  { %2104 = vmatprep.subr.bf16.mxu1 %v2540_v1 }
 0x508   :  { %2106 = vmatpush3.bf16.msra.mxu1 %v2683_v61 }
 0x509   :  { %2107 = vmatprep.subr.bf16.mxu1 %v2540_v1 }
 0x50c   :  { %2109 = vmatpush3.bf16.msra.mxu1 %v2687_v2 }
 0x50d   :  { %2110 = vmatprep.subr.bf16.mxu1 %v2540_v1 }
 0x510   :  { %2112 = vmatpush3.bf16.msra.mxu1 %v2691_v6 }
 0x511   :  { %2113 = vmatprep.subr.bf16.mxu1 %v2540_v1 }
 0x514   :  { %2115 = vmatpush3.bf16.msra.mxu1 %v2694_v11 }
 0x515   :  { %2116 = vmatprep.subr.bf16.mxu1 %v2540_v1 }
 0x518   :  { %2118 = vmatpush3.bf16.msra.mxu1 %v2700_v14 }
 0x519   :  { %2151 = vmatprep.subr.bf16.mxu1 %v2540_v1 }
 0x5ce   :  { %v598_v47 = vpop.f32.mrb[4].mxu1 }
 0x5cf   :  { %v602_v50 = vadd.f32 %v598_v47, %v445_v44  ;;  %v1719_v51 = vpop.f32.mrb[5].mxu1 }
 0x5d0   :  { %v778_v51 = vld [vmem:[#allocation3 + $0x68] sm:$0xff] }
 0x5d1   :  { %2382 = vtanh.f32 %v602_v50 }
 0x5d2   :  { %2384 = vrcp.f32 %v528_v48 }
 0x5db   :  { %v2383_v53 = vpop.eup %2382 }
 0x5dc   :  { %v604_v54 = vsub.f32 %v2383_v53, %v2765_v24  ;;  %v2385_v56 = vpop.eup %2384 }
 0x5de   :  { %v605_v57 = vmul.f32 %v2385_v56, %v604_v54 }
 0x5e0   :  { %v2807_v59 = vadd.f32 %v605_v57, %v2765_v24  ;;  %v779_v57 = vld [vmem:[#allocation3 + $0x70] sm:$0xff] }
 0x5e2   :  { %678 = vmatmul.mubr.f32.vlgmr.msra.gmra.mrb[6].mxu0 %v2807_v59  ;;  %608 = vst [vmem:[#allocation9 + $0x10] sm:$0xff] %v2807_v59 }
 0x5e3   :  { %2122 = vmatpush1.bf16.msra.mxu0 %v2606_v9  ;;  %844 = vmatprep.mubr.f32.mxu0 %v2539_v0 }
 0x5e4   :  { %2124 = vmatprep.subr.bf16.mxu0 %v2608_v10 }
 0x5e7   :  { %2126 = vmatpush1.bf16.msra.mxu0 %v2612_v15 }
 0x5e8   :  { %2128 = vmatprep.subr.bf16.mxu0 %v2615_v16 }
 0x5eb   :  { %2130 = vmatpush1.bf16.msra.mxu0 %v2618_v21 }
 0x5ec   :  { %2132 = vmatprep.subr.bf16.mxu0 %v2621_v22 }
 0x5ef   :  { %2134 = vmatpush1.bf16.msra.mxu0 %v2624_v27 }
 0x5f0   :  { %2136 = vmatprep.subr.bf16.mxu0 %v2627_v28 }
 0x5f3   :  { %2138 = vmatpush1.bf16.msra.mxu0 %v2630_v33 }
 0x5f4   :  { %2140 = vmatprep.subr.bf16.mxu0 %v2633_v34 }
 0x5f7   :  { %2142 = vmatpush1.bf16.msra.mxu0 %v2636_v39 }
 0x5f8   :  { %2144 = vmatprep.subr.bf16.mxu0 %v2639_v40 }
 0x5fb   :  { %2146 = vmatpush1.bf16.msra.mxu0 %v2642_v45 }
 0x5fc   :  { %2148 = vmatprep.subr.bf16.mxu0 %v2645_v46 }
 0x5ff   :  { %2150 = vmatpush1.bf16.msra.mxu0 %v2648_v49 }
 0x600   :  { %2176 = vmatprep.subr.bf16.mxu0 %v2604_v5 }
 0x6b5   :  { %v679_v62 = vpop.f32.mrb[6].mxu0 }
 0x6b6   :  { %v684_v63 = vadd.f32 %v679_v62, %v610_v60  ;;  %v681_v3 = vpop.f32.mrb[7].mxu0 }
 0x6b7   :  { %v691_v18 = vadd.f32 %v681_v3, %v611_v17 }
 0x6b8   :  { %v1469_v4 = vmul.f32 -1.442695, %v684_v63 }
 0x6b9   :  { %v1470_v19 = vmul.f32 -1.442695, %v691_v18 }
 0x6ba   :  { %2386 = vpow2.f32 %v1469_v4 }
 0x6c4   :  { %v2387_v7 = vpop.eup %2386 }
 0x6c5   :  { %v688_v8 = vadd.f32 1.0, %v2387_v7 }
 0x6c7   :  { %2388 = vrcp.f32 %v688_v8 }
 0x6c8   :  { %2390 = vpow2.f32 %v1470_v19 }
 0x6d1   :  { %v2389_v12 = vpop.eup %2388 }
 0x6d2   :  { %v698_v13 = vmul.f32 %v2389_v12, %v2807_v59  ;;  %v2391_v20 = vpop.eup %2390 }
 0x6d3   :  { %v695_v25 = vadd.f32 1.0, %v2391_v20 }
 0x6d4   :  { %1753 = vmatmul.mubr.f32.vlgmr.msra.gmra.mrb[6].mxu1 %v698_v13  ;;  %v944_v13 = vld [vmem:[#allocation3 + $0x78] sm:$0xff] }
 0x6d5   :  { %2153 = vmatpush3.bf16.msra.mxu1 %v2671_v52  ;;  %1787 = vmatprep.mubr.msk.f32.mxu1 %vm2541_vm0, %v2539_v0 }
 0x6d6   :  { %2154 = vmatprep.subr.bf16.mxu1 %v2540_v1 }
 0x6d9   :  { %2156 = vmatpush3.bf16.msra.mxu1 %v2675_v55 }
 0x6da   :  { %2157 = vmatprep.subr.bf16.mxu1 %v2540_v1 }
 0x6dd   :  { %2159 = vmatpush3.bf16.msra.mxu1 %v2679_v58 }
 0x6de   :  { %2160 = vmatprep.subr.bf16.mxu1 %v2540_v1 }
 0x6e1   :  { %2162 = vmatpush3.bf16.msra.mxu1 %v2683_v61 }
 0x6e2   :  { %2163 = vmatprep.subr.bf16.mxu1 %v2540_v1 }
 0x6e5   :  { %2165 = vmatpush3.bf16.msra.mxu1 %v2687_v2 }
 0x6e6   :  { %2166 = vmatprep.subr.bf16.mxu1 %v2540_v1 }
 0x6e9   :  { %2168 = vmatpush3.bf16.msra.mxu1 %v2691_v6 }
 0x6ea   :  { %2169 = vmatprep.subr.bf16.mxu1 %v2540_v1 }
 0x6ed   :  { %2171 = vmatpush3.bf16.msra.mxu1 %v2694_v11 }
 0x6ee   :  { %2172 = vmatprep.subr.bf16.mxu1 %v2540_v1 }
 0x6f1   :  { %2174 = vmatpush3.bf16.msra.mxu1 %v2700_v14 }
 0x6f2   :  { %2207 = vmatprep.subr.bf16.mxu1 %v2540_v1 }
 0x7a7   :  { %v765_v24 = vpop.f32.mrb[6].mxu1 }
 0x7a8   :  { %v769_v26 = vadd.f32 %v765_v24, %v612_v23  ;;  %v1754_v29 = vpop.f32.mrb[7].mxu1 }
 0x7aa   :  { %2392 = vtanh.f32 %v769_v26 }
 0x7ab   :  { %2394 = vrcp.f32 %v695_v25 }
 0x7b4   :  { %v2393_v30 = vpop.eup %2392 }
 0x7b5   :  { %v771_v31 = vsub.f32 %v2393_v30, %v2807_v59  ;;  %v2395_v32 = vpop.eup %2394 }
 0x7b7   :  { %v772_v35 = vmul.f32 %v2395_v32, %v771_v31  ;;  %v946_v32 = vld [vmem:[#allocation3 + $0x88] sm:$0xff] }
 0x7b9   :  { %v2849_v36 = vadd.f32 %v772_v35, %v2807_v59 }
 0x7bb   :  { %845 = vmatmul.mubr.f32.vlgmr.msra.gmra.mrb[8].mxu0 %v2849_v36  ;;  %775 = vst [vmem:[#allocation9 + $0x18] sm:$0xff] %v2849_v36 }
 0x7bc   :  { %2178 = vmatpush1.bf16.msra.mxu0 %v2606_v9  ;;  %1011 = vmatprep.mubr.f32.mxu0 %v2539_v0 }
 0x7bd   :  { %2180 = vmatprep.subr.bf16.mxu0 %v2608_v10 }
 0x7c0   :  { %2182 = vmatpush1.bf16.msra.mxu0 %v2612_v15 }
 0x7c1   :  { %2184 = vmatprep.subr.bf16.mxu0 %v2615_v16 }
 0x7c4   :  { %2186 = vmatpush1.bf16.msra.mxu0 %v2618_v21 }
 0x7c5   :  { %2188 = vmatprep.subr.bf16.mxu0 %v2621_v22 }
 0x7c8   :  { %2190 = vmatpush1.bf16.msra.mxu0 %v2624_v27 }
 0x7c9   :  { %2192 = vmatprep.subr.bf16.mxu0 %v2627_v28 }
 0x7cc   :  { %2194 = vmatpush1.bf16.msra.mxu0 %v2630_v33 }
 0x7cd   :  { %2196 = vmatprep.subr.bf16.mxu0 %v2633_v34 }
 0x7d0   :  { %2198 = vmatpush1.bf16.msra.mxu0 %v2636_v39 }
 0x7d1   :  { %2200 = vmatprep.subr.bf16.mxu0 %v2639_v40 }
 0x7d4   :  { %2202 = vmatpush1.bf16.msra.mxu0 %v2642_v45 }
 0x7d5   :  { %2204 = vmatprep.subr.bf16.mxu0 %v2645_v46 }
 0x7d8   :  { %2206 = vmatpush1.bf16.msra.mxu0 %v2648_v49 }
 0x7d9   :  { %2232 = vmatprep.subr.bf16.mxu0 %v2604_v5 }
 0x88e   :  { %v846_v38 = vpop.f32.mrb[8].mxu0 }
 0x88f   :  { %v851_v41 = vadd.f32 %v846_v38, %v777_v37  ;;  %v848_v42 = vpop.f32.mrb[9].mxu0 }
 0x890   :  { %v858_v53 = vadd.f32 %v848_v42, %v778_v51 }
 0x891   :  { %v1471_v43 = vmul.f32 -1.442695, %v851_v41 }
 0x892   :  { %v1472_v54 = vmul.f32 -1.442695, %v858_v53 }
 0x893   :  { %2396 = vpow2.f32 %v1471_v43 }
 0x89d   :  { %v2397_v44 = vpop.eup %2396 }
 0x89e   :  { %v855_v47 = vadd.f32 1.0, %v2397_v44 }
 0x8a0   :  { %2398 = vrcp.f32 %v855_v47 }
 0x8a1   :  { %2400 = vpow2.f32 %v1472_v54 }
 0x8aa   :  { %v2399_v48 = vpop.eup %2398 }
 0x8ab   :  { %v865_v50 = vmul.f32 %v2399_v48, %v2849_v36  ;;  %v2401_v56 = vpop.eup %2400 }
 0x8ac   :  { %v862_v60 = vadd.f32 1.0, %v2401_v56 }
 0x8ad   :  { %1788 = vmatmul.mubr.f32.vlgmr.msra.gmra.mrb[8].mxu1 %v865_v50 }
 0x8ae   :  { %2209 = vmatpush3.bf16.msra.mxu1 %v2671_v52  ;;  %1822 = vmatprep.mubr.msk.f32.mxu1 %vm2541_vm0, %v2539_v0 }
 0x8af   :  { %2210 = vmatprep.subr.bf16.mxu1 %v2540_v1 }
 0x8b2   :  { %2212 = vmatpush3.bf16.msra.mxu1 %v2675_v55 }
 0x8b3   :  { %2213 = vmatprep.subr.bf16.mxu1 %v2540_v1 }
 0x8b6   :  { %2215 = vmatpush3.bf16.msra.mxu1 %v2679_v58 }
 0x8b7   :  { %2216 = vmatprep.subr.bf16.mxu1 %v2540_v1 }
 0x8ba   :  { %2218 = vmatpush3.bf16.msra.mxu1 %v2683_v61 }
 0x8bb   :  { %2219 = vmatprep.subr.bf16.mxu1 %v2540_v1 }
 0x8be   :  { %2221 = vmatpush3.bf16.msra.mxu1 %v2687_v2 }
 0x8bf   :  { %2222 = vmatprep.subr.bf16.mxu1 %v2540_v1 }
 0x8c2   :  { %2224 = vmatpush3.bf16.msra.mxu1 %v2691_v6 }
 0x8c3   :  { %2225 = vmatprep.subr.bf16.mxu1 %v2540_v1 }
 0x8c6   :  { %2227 = vmatpush3.bf16.msra.mxu1 %v2694_v11 }
 0x8c7   :  { %2228 = vmatprep.subr.bf16.mxu1 %v2540_v1 }
 0x8ca   :  { %2230 = vmatpush3.bf16.msra.mxu1 %v2700_v14 }
 0x8cb   :  { %2263 = vmatprep.subr.bf16.mxu1 %v2540_v1 }
 0x980   :  { %v932_v59 = vpop.f32.mrb[8].mxu1 }
 0x981   :  { %v936_v62 = vadd.f32 %v932_v59, %v779_v57  ;;  %v1789_v63 = vpop.f32.mrb[9].mxu1  ;;  %v1279_v59 = vld [vmem:[#allocation3 + $0xb0] sm:$0xff] }
 0x983   :  { %2402 = vtanh.f32 %v936_v62 }
 0x984   :  { %2404 = vrcp.f32 %v862_v60 }
 0x98d   :  { %v2403_v3 = vpop.eup %2402 }
 0x98e   :  { %v938_v4 = vsub.f32 %v2403_v3, %v2849_v36  ;;  %v2405_v7 = vpop.eup %2404  ;;  %v1280_v3 = vld [vmem:[#allocation3 + $0xb8] sm:$0xff] }
 0x990   :  { %v939_v8 = vmul.f32 %v2405_v7, %v938_v4 }
 0x992   :  { %v2891_v12 = vadd.f32 %v939_v8, %v2849_v36 }
 0x994   :  { %1012 = vmatmul.mubr.f32.vlgmr.msra.gmra.mrb[10].mxu0 %v2891_v12  ;;  %942 = vst [vmem:[#allocation9 + $0x20] sm:$0xff] %v2891_v12 }
 0x995   :  { %2234 = vmatpush1.bf16.msra.mxu0 %v2606_v9  ;;  %1178 = vmatprep.mubr.f32.mxu0 %v2539_v0 }
 0x996   :  { %2236 = vmatprep.subr.bf16.mxu0 %v2608_v10 }
 0x999   :  { %2238 = vmatpush1.bf16.msra.mxu0 %v2612_v15 }
 0x99a   :  { %2240 = vmatprep.subr.bf16.mxu0 %v2615_v16 }
 0x99d   :  { %2242 = vmatpush1.bf16.msra.mxu0 %v2618_v21 }
 0x99e   :  { %2244 = vmatprep.subr.bf16.mxu0 %v2621_v22 }
 0x9a1   :  { %2246 = vmatpush1.bf16.msra.mxu0 %v2624_v27 }
 0x9a2   :  { %2248 = vmatprep.subr.bf16.mxu0 %v2627_v28 }
 0x9a5   :  { %2250 = vmatpush1.bf16.msra.mxu0 %v2630_v33 }
 0x9a6   :  { %2252 = vmatprep.subr.bf16.mxu0 %v2633_v34 }
 0x9a9   :  { %2254 = vmatpush1.bf16.msra.mxu0 %v2636_v39 }
 0x9aa   :  { %2256 = vmatprep.subr.bf16.mxu0 %v2639_v40 }
 0x9ad   :  { %2258 = vmatpush1.bf16.msra.mxu0 %v2642_v45 }
 0x9ae   :  { %2260 = vmatprep.subr.bf16.mxu0 %v2645_v46 }
 0x9b1   :  { %2262 = vmatpush1.bf16.msra.mxu0 %v2648_v49 }
 0x9b2   :  { %2288 = vmatprep.subr.bf16.mxu0 %v2604_v5  ;;  %v945_v5 = vld [vmem:[#allocation3 + $0x80] sm:$0xff] }
 0xa67   :  { %v1013_v17 = vpop.f32.mrb[10].mxu0 }
 0xa68   :  { %v1018_v18 = vadd.f32 %v1013_v17, %v944_v13  ;;  %v1015_v19 = vpop.f32.mrb[11].mxu0 }
 0xa69   :  { %v1025_v29 = vadd.f32 %v1015_v19, %v945_v5 }
 0xa6a   :  { %v1473_v20 = vmul.f32 -1.442695, %v1018_v18 }
 0xa6b   :  { %v1474_v30 = vmul.f32 -1.442695, %v1025_v29 }
 0xa6c   :  { %2406 = vpow2.f32 %v1473_v20 }
 0xa76   :  { %v2407_v23 = vpop.eup %2406 }
 0xa77   :  { %v1022_v24 = vadd.f32 1.0, %v2407_v23 }
 0xa79   :  { %2408 = vrcp.f32 %v1022_v24 }
 0xa7a   :  { %2410 = vpow2.f32 %v1474_v30 }
 0xa83   :  { %v2409_v25 = vpop.eup %2408 }
 0xa84   :  { %v1032_v26 = vmul.f32 %v2409_v25, %v2891_v12  ;;  %v2411_v31 = vpop.eup %2410 }
 0xa85   :  { %v1029_v36 = vadd.f32 1.0, %v2411_v31 }
 0xa86   :  { %1823 = vmatmul.mubr.f32.vlgmr.msra.gmra.mrb[10].mxu1 %v1032_v26 }
 0xa87   :  { %2265 = vmatpush3.bf16.msra.mxu1 %v2671_v52  ;;  %1857 = vmatprep.mubr.msk.f32.mxu1 %vm2541_vm0, %v2539_v0 }
 0xa88   :  { %2266 = vmatprep.subr.bf16.mxu1 %v2540_v1 }
 0xa8b   :  { %2268 = vmatpush3.bf16.msra.mxu1 %v2675_v55 }
 0xa8c   :  { %2269 = vmatprep.subr.bf16.mxu1 %v2540_v1 }
 0xa8f   :  { %2271 = vmatpush3.bf16.msra.mxu1 %v2679_v58 }
 0xa90   :  { %2272 = vmatprep.subr.bf16.mxu1 %v2540_v1 }
 0xa93   :  { %2274 = vmatpush3.bf16.msra.mxu1 %v2683_v61 }
 0xa94   :  { %2275 = vmatprep.subr.bf16.mxu1 %v2540_v1 }
 0xa97   :  { %2277 = vmatpush3.bf16.msra.mxu1 %v2687_v2 }
 0xa98   :  { %2278 = vmatprep.subr.bf16.mxu1 %v2540_v1 }
 0xa9b   :  { %2280 = vmatpush3.bf16.msra.mxu1 %v2691_v6 }
 0xa9c   :  { %2281 = vmatprep.subr.bf16.mxu1 %v2540_v1 }
 0xa9f   :  { %2283 = vmatpush3.bf16.msra.mxu1 %v2694_v11 }
 0xaa0   :  { %2284 = vmatprep.subr.bf16.mxu1 %v2540_v1 }
 0xaa3   :  { %2286 = vmatpush3.bf16.msra.mxu1 %v2700_v14 }
 0xaa4   :  { %2319 = vmatprep.subr.bf16.mxu1 %v2540_v1 }
 0xb59   :  { %v1099_v35 = vpop.f32.mrb[10].mxu1 }
 0xb5a   :  { %v1103_v37 = vadd.f32 %v1099_v35, %v946_v32  ;;  %v1824_v38 = vpop.f32.mrb[11].mxu1 }
 0xb5c   :  { %2412 = vtanh.f32 %v1103_v37 }
 0xb5d   :  { %2414 = vrcp.f32 %v1029_v36 }
 0xb66   :  { %v2413_v41 = vpop.eup %2412 }
 0xb67   :  { %v1105_v42 = vsub.f32 %v2413_v41, %v2891_v12  ;;  %v2415_v43 = vpop.eup %2414 }
 0xb69   :  { %v1106_v44 = vmul.f32 %v2415_v43, %v1105_v42 }
 0xb6b   :  { %v2933_v47 = vadd.f32 %v1106_v44, %v2891_v12 }
 0xb6d   :  { %1179 = vmatmul.mubr.f32.vlgmr.msra.gmra.mrb[12].mxu0 %v2933_v47  ;;  %1109 = vst [vmem:[#allocation9 + $0x28] sm:$0xff] %v2933_v47 }
 0xb6e   :  { %2290 = vmatpush1.bf16.msra.mxu0 %v2606_v9  ;;  %1345 = vmatprep.mubr.f32.mxu0 %v2539_v0  ;;  %v1111_v9 = vld [vmem:[#allocation3 + $0x90] sm:$0xff] }
 0xb6f   :  { %2292 = vmatprep.subr.bf16.mxu0 %v2608_v10 }
 0xb72   :  { %2294 = vmatpush1.bf16.msra.mxu0 %v2612_v15 }
 0xb73   :  { %2296 = vmatprep.subr.bf16.mxu0 %v2615_v16 }
 0xb76   :  { %2298 = vmatpush1.bf16.msra.mxu0 %v2618_v21 }
 0xb77   :  { %2300 = vmatprep.subr.bf16.mxu0 %v2621_v22 }
 0xb7a   :  { %2302 = vmatpush1.bf16.msra.mxu0 %v2624_v27 }
 0xb7b   :  { %2304 = vmatprep.subr.bf16.mxu0 %v2627_v28 }
 0xb7e   :  { %2306 = vmatpush1.bf16.msra.mxu0 %v2630_v33 }
 0xb7f   :  { %2308 = vmatprep.subr.bf16.mxu0 %v2633_v34 }
 0xb82   :  { %2310 = vmatpush1.bf16.msra.mxu0 %v2636_v39 }
 0xb83   :  { %2312 = vmatprep.subr.bf16.mxu0 %v2639_v40 }
 0xb86   :  { %2314 = vmatpush1.bf16.msra.mxu0 %v2642_v45  ;;  %v1113_v45 = vld [vmem:[#allocation3 + $0xa0] sm:$0xff] }
 0xb87   :  { %2316 = vmatprep.subr.bf16.mxu0 %v2645_v46 }
 0xb8a   :  { %2318 = vmatpush1.bf16.msra.mxu0 %v2648_v49 }
 0xc40   :  { %v1180_v10 = vpop.f32.mrb[12].mxu0 }
 0xc41   :  { %v1185_v15 = vadd.f32 %v1180_v10, %v1111_v9  ;;  %v1182_v16 = vpop.f32.mrb[13].mxu0 }
 0xc43   :  { %v1475_v21 = vmul.f32 -1.442695, %v1185_v15 }
 0xc45   :  { %2416 = vpow2.f32 %v1475_v21 }
 0xc4f   :  { %v2417_v22 = vpop.eup %2416 }
 0xc50   :  { %v1189_v27 = vadd.f32 1.0, %v2417_v22 }
 0xc52   :  { %2418 = vrcp.f32 %v1189_v27 }
 0xc5c   :  { %v2419_v28 = vpop.eup %2418 }
 0xc5d   :  { %v1199_v33 = vmul.f32 %v2419_v28, %v2933_v47 }
 0xc5f   :  { %1858 = vmatmul.mubr.f32.vlgmr.msra.gmra.mrb[12].mxu1 %v1199_v33 }
 0xc60   :  { %2321 = vmatpush3.bf16.msra.mxu1 %v2671_v52  ;;  %1892 = vmatprep.mubr.msk.f32.mxu1 %vm2541_vm0, %v2539_v0  ;;  %v1112_v0 = vld [vmem:[#allocation3 + $0x98] sm:$0xff] }
 0xc61   :  { %2322 = vmatprep.subr.bf16.mxu1 %v2540_v1  ;;  %v1192_v34 = vadd.f32 %v1182_v16, %v1112_v0 }
 0xc63   :  { %v1476_v39 = vmul.f32 -1.442695, %v1192_v34 }
 0xc64   :  { %2324 = vmatpush3.bf16.msra.mxu1 %v2675_v55 }
 0xc65   :  { %2325 = vmatprep.subr.bf16.mxu1 %v2540_v1  ;;  %2420 = vpow2.f32 %v1476_v39 }
 0xc68   :  { %2327 = vmatpush3.bf16.msra.mxu1 %v2679_v58 }
 0xc69   :  { %2328 = vmatprep.subr.bf16.mxu1 %v2540_v1 }
 0xc6c   :  { %2330 = vmatpush3.bf16.msra.mxu1 %v2683_v61 }
 0xc6d   :  { %2331 = vmatprep.subr.bf16.mxu1 %v2540_v1 }
 0xc6f   :  { %v2421_v40 = vpop.eup %2420 }
 0xc70   :  { %2333 = vmatpush3.bf16.msra.mxu1 %v2687_v2  ;;  %v1196_v49 = vadd.f32 1.0, %v2421_v40 }
 0xc71   :  { %2334 = vmatprep.subr.bf16.mxu1 %v2540_v1 }
 0xc74   :  { %2336 = vmatpush3.bf16.msra.mxu1 %v2691_v6 }
 0xc75   :  { %2337 = vmatprep.subr.bf16.mxu1 %v2540_v1 }
 0xc78   :  { %2339 = vmatpush3.bf16.msra.mxu1 %v2694_v11  ;;  %v1278_v11 = vld [vmem:[#allocation3 + $0xa8] sm:$0xff] }
 0xc79   :  { %2340 = vmatprep.subr.bf16.mxu1 %v2540_v1 }
 0xc7c   :  { %2342 = vmatpush3.bf16.msra.mxu1 %v2700_v14 }
 0xd32   :  { %v1266_v46 = vpop.f32.mrb[12].mxu1 }
 0xd33   :  { %v1270_v52 = vadd.f32 %v1266_v46, %v1113_v45  ;;  %v1859_v55 = vpop.f32.mrb[13].mxu1 }
 0xd35   :  { %2422 = vtanh.f32 %v1270_v52 }
 0xd36   :  { %2424 = vrcp.f32 %v1196_v49 }
 0xd3f   :  { %v2423_v58 = vpop.eup %2422 }
 0xd40   :  { %v1272_v61 = vsub.f32 %v2423_v58, %v2933_v47  ;;  %v2425_v2 = vpop.eup %2424 }
 0xd42   :  { %v1273_v6 = vmul.f32 %v2425_v2, %v1272_v61 }
 0xd44   :  { %v1274_v1 = vadd.f32 %v1273_v6, %v2933_v47 }
 0xd46   :  { %1346 = vmatmul.mubr.f32.vlgmr.msra.gmra.mrb[14].mxu0 %v1274_v1  ;;  %1276 = vst [vmem:[#allocation9 + $0x30] sm:$0xff] %v1274_v1 }
 0xe19   :  { %v1347_v14 = vpop.f32.mrb[14].mxu0 }
 0xe1a   :  { %v1352_v48 = vadd.f32 %v1347_v14, %v1278_v11  ;;  %v1349_v50 = vpop.f32.mrb[15].mxu0 }
 0xe1b   :  { %v1359_v60 = vadd.f32 %v1349_v50, %v1279_v59 }
 0xe1c   :  { %v1477_v51 = vmul.f32 -1.442695, %v1352_v48 }
 0xe1d   :  { %v1478_v62 = vmul.f32 -1.442695, %v1359_v60 }
 0xe1e   :  { %2426 = vpow2.f32 %v1477_v51 }
 0xe28   :  { %v2427_v53 = vpop.eup %2426 }
 0xe29   :  { %v1356_v54 = vadd.f32 1.0, %v2427_v53 }
 0xe2b   :  { %2428 = vrcp.f32 %v1356_v54 }
 0xe2c   :  { %2430 = vpow2.f32 %v1478_v62 }
 0xe35   :  { %v2429_v56 = vpop.eup %2428 }
 0xe36   :  { %v1366_v57 = vmul.f32 %v2429_v56, %v1274_v1  ;;  %v2431_v63 = vpop.eup %2430 }
 0xe37   :  { %v1363_v7 = vadd.f32 1.0, %v2431_v63 }
 0xe38   :  { %1893 = vmatmul.mubr.f32.vlgmr.msra.gmra.mrb[14].mxu1 %v1366_v57 }
 0xf0b   :  { %v1433_v4 = vpop.f32.mrb[14].mxu1 }
 0xf0c   :  { %v1437_v8 = vadd.f32 %v1433_v4, %v1280_v3  ;;  %v1894_v12 = vpop.f32.mrb[15].mxu1 }
 0xf0e   :  { %2432 = vtanh.f32 %v1437_v8 }
 0xf0f   :  { %2434 = vrcp.f32 %v1363_v7 }
 0xf18   :  { %v2433_v13 = vpop.eup %2432 }
 0xf19   :  { %v1439_v17 = vsub.f32 %v2433_v13, %v1274_v1  ;;  %v2435_v18 = vpop.eup %2434 }
 0xf1b   :  { %v1440_v19 = vmul.f32 %v2435_v18, %v1439_v17 }
 0xf1d   :  { %v1441_v20 = vadd.f32 %v1440_v19, %v1274_v1 }
 0xf1f   :  { %1443 = vst [vmem:[#allocation9 + $0x38] sm:$0xff] %v1441_v20 }
 0xf20   :  { %2513 = shalt.err (!%p2510_p0)
}
 0xf21   :  { %s2514_s29 = scalar_lea.hbm %s2991_s3, 1024 }
 0xf22   :  { %p2515_p1 = scmp.ne.s32.totalorder %s2991_s3, %s2514_s29  ;;  %p2518_p2 = scmp.lt.u32.totalorder %s2514_s29, %s2991_s3 }
 0xf24   :  { %p2520_p3 = pnand %p2518_p2, %p2515_p1 }
 0xf26   :  { %2523 = shalt.err (!%p2520_p3)
}
 0xf27   :  { %1456 = dma.vmem_to_hbm [thread:$0]  %s1451_s25, 1024, %s2991_s3, [#allocation5], %s2537_s0, %s2537_s0, %s2538_s22  }
 0xf28   :  { %2528 = dma.done.wait [#allocation5], 1024  }
 0xf29   :  { %2529 = vsyncadd [#allocation5], 4294966272 }
 0xf2a   :  { %1460 = vsyncpa [#allocation4], 1 }
 0xf2b   :  { %1461 = vsyncpa [#allocation7], 1 }
 0xf2c   :  { %1462 = vsyncpa [#allocation5], 1 }

</bundles_post_ra>
